<compile_context>
chip_gen: v6e
topology: v6e:2x2x1
jax: 0.10.0
libtpu: 0.0.40
codegen_flags: <defaults>
</compile_context>

<pallas_src>
import functools

import jax
import jax.numpy as jnp
from jax.experimental import pallas as pl
from jax.experimental.pallas import tpu as pltpu


def _round_up(n, m):
    return ((n + m - 1) // m) * m


def _pad_to(a, shape):
    return jnp.pad(a, [(0, t - s) for s, t in zip(a.shape, shape)])


def _pick_vmem_limit_bytes():
    # Leave ~25% headroom for compiler scratch / double buffers:
    # v7x (64 MiB physical) -> 48 MiB; v5e/v6e (128 MiB) -> 96 MiB.
    cap = 64 * 1024 * 1024
    try:
        info = pltpu.get_tpu_info()
        cap = int(getattr(info, "vmem_capacity_bytes", cap) or cap)
    except Exception:
        pass
    return (cap * 3) // 4


def _choose_row_tile(H, W):
    """Rows per spatial tile: 128..512 matmul rows per tile, tile_rows*W a
    multiple of 128 (lane-dense NCHW output stores), and >= 2 tiles per image
    when possible (v7x dual-TC / exercises the accumulator path)."""
    divs = [d for d in range(1, H + 1) if H % d == 0]
    cands = [d for d in divs if (d * W) % 128 == 0 and d * W <= 512]
    if not cands:
        cands = [d for d in divs if (d * W) % 128 == 0 and d * W <= 1024]
    if not cands:
        return H          # whole image (still correct; larger VMEM block)
    multi = [d for d in cands if d < H]
    return max(multi) if multi else max(cands)


# ----------------------------------------------------------------------------
# Pass 1: 3x3 conv as 9 accumulating per-tap MXU matmuls (bf16 in, f32 acc),
#         bf16 conv writeback, per-sample BN partial sums and input-avg sums
#         accumulated across the spatial (m) axis.
# grid = (B, n_m), ("parallel", "arbitrary")
# ----------------------------------------------------------------------------
def conv_stats_kernel(xpad_ref, wconv_ref, bconv_ref,
                      conv_ref, csum_ref, csumsq_ref, xsum_ref, *, tm_rows):
    m = pl.program_id(1)
    _, Hp, Wp, Cpi = xpad_ref.shape
    W = Wp - 2
    TM = tm_rows * W
    Cpo = conv_ref.shape[-1]

    @pl.when(m == 0)
    def _():
        csum_ref[...] = jnp.zeros_like(csum_ref)
        csumsq_ref[...] = jnp.zeros_like(csumsq_ref)
        xsum_ref[...] = jnp.zeros_like(xsum_ref)

    r0 = pl.multiple_of(m * tm_rows, tm_rows)   # first output row of this tile

    # 9 accumulating tap matmuls (no im2col staging buffer / concat).
    # NOTE(v6e/v7x): pairwise tap fusion (K = 2*Cpi) would fill the 2x256^2
    # MXU better at the cost of a small staging copy.
    acc = jnp.zeros((TM, Cpo), jnp.float32)
    tap = 0
    for dh in range(3):
        for dw in range(3):
            win = xpad_ref[:, pl.ds(r0 + dh, tm_rows), dw:dw + W, :]
            win = win.reshape(TM, Cpi)                       # bf16 (TM, Cpi)
            if dh == 1 and dw == 1:
                # center tap == un-shifted input rows: reuse it for the
                # per-sample global-average-pool partial sum (f32).
                xsum_ref[0] += jnp.sum(win.astype(jnp.float32),
                                       axis=0, keepdims=True)
            acc = acc + jnp.dot(win, wconv_ref[tap],
                                preferred_element_type=jnp.float32)
            tap += 1

    conv = acc + bconv_ref[...]                              # (TM, Cpo) f32

    # BN partial sums in f32, *before* the bf16 downcast.
    csum_ref[0] += jnp.sum(conv, axis=0, keepdims=True)
    csumsq_ref[0] += jnp.sum(conv * conv, axis=0, keepdims=True)

    conv_ref[0] = conv.astype(conv_ref.dtype)                # bf16 writeback


# ----------------------------------------------------------------------------
# Pass 2 (tiny, grid=(1,)): MaskBlock (fc1 -> relu -> fc2 -> sigmoid ->
#         top-30% threshold mask) + BatchNorm batch-stat finalization.
# ----------------------------------------------------------------------------
def mask_bn_stats_kernel(xsum_ref, w1_ref, w2_ref, b2_ref,
                         csum_ref, csumsq_ref, gamma_ref, beta_ref,
                         score_ref, mb_ref, lasso_ref, scale_ref, shift_ref,
                         *, n_total, hw, c_out, k):
    B = xsum_ref.shape[0]
    x_avg = xsum_ref[...].reshape(B, -1) * (1.0 / float(hw))   # (B, Cpi) f32

    hdn = jnp.maximum(
        jnp.dot(x_avg, w1_ref[...], preferred_element_type=jnp.float32), 0.0)
    y = jnp.dot(hdn, w2_ref[...],
                preferred_element_type=jnp.float32) + b2_ref[...]
    mb = 1.0 / (1.0 + jnp.exp(-y))                           # sigmoid (EUP)

    # zero the zero-padded channel columns so they never win the threshold
    col = jax.lax.broadcasted_iota(jnp.int32, mb.shape, 1)
    mb = jnp.where(col < c_out, mb, 0.0)
    mb_ref[...] = mb
    lasso_ref[...] = jnp.sum(mb, axis=-1, keepdims=True) / float(c_out)

    # top-30% threshold == value at descending-sort index k, via one
    # broadcasted rank count (no sort, no per-channel loop).  Threshold VALUE
    # matches torch.sort even under ties.
    cnt = jnp.sum((mb[:, None, :] >= mb[:, :, None]).astype(jnp.float32),
                  axis=-1)                                   # (B, Cpo)
    cand = jnp.where(cnt >= (k + 1), mb, -jnp.inf)
    thred = jnp.max(cand, axis=-1, keepdims=True)            # (B, 1)
    mask = (mb > thred).astype(jnp.float32)
    score_ref[...] = mb * mask

    # BatchNorm2d training-mode batch statistics (biased var, eps = 1e-5).
    # TODO(synk): E[x^2]-mean^2 cancels at large activation magnitudes; switch
    # to shifted/Welford accumulation for real checkpoints if needed.
    csum = csum_ref[...].reshape(B, -1)
    csumsq = csumsq_ref[...].reshape(B, -1)
    mean = jnp.sum(csum, axis=0, keepdims=True) / float(n_total)
    ex2 = jnp.sum(csumsq, axis=0, keepdims=True) / float(n_total)
    var = ex2 - mean * mean
    scale = gamma_ref[...] * jax.lax.rsqrt(var + 1e-5)
    scale_ref[...] = scale
    shift_ref[...] = beta_ref[...] - mean * scale


# ----------------------------------------------------------------------------
# Pass 3: BN + ReLU + spatial-average accumulation + channel masking, with an
#         in-kernel transpose so the output is written lane-dense in
#         (B, Cout, HW) layout (no wrapper transpose/slice round trip).
# grid = (B, n_m), ("parallel", "arbitrary")
# ----------------------------------------------------------------------------
def bn_relu_mask_kernel(conv_ref, scale_ref, shift_ref, score_ref,
                        out_ref, avg_ref, *, c_out, inv_hw):
    m = pl.program_id(1)

    @pl.when(m == 0)
    def _():
        avg_ref[...] = jnp.zeros_like(avg_ref)

    c = conv_ref[0].astype(jnp.float32)                      # (TM, Cpo)
    r = jnp.maximum(c * scale_ref[...] + shift_ref[...], 0.0)
    avg_ref[0] += jnp.sum(r, axis=0, keepdims=True)          # accumulate sum

    masked = r * score_ref[0]                                 # (TM, Cpo)
    # in-kernel NHWC -> NCHW: write (Cout, TM) directly (XLU transpose; pass 3
    # is memory-bound so the transpose slot is essentially free).
    out_ref[0] = jnp.transpose(masked)[:c_out, :]

    @pl.when(m == pl.num_programs(1) - 1)
    def _():
        avg_ref[...] = avg_ref[...] * inv_hw                  # finalize mean


# ----------------------------------------------------------------------------
# Wrapper
# ----------------------------------------------------------------------------
def mask_vgg_block_forward(params, state):
    """state = [x_nchw, mask_list, lasso_list, mask_before_list, avg_fea_list]"""
    x_nchw, mask_list, lasso_list, mb_list, avg_list = state
    B, Cin, H, W = x_nchw.shape
    Cout = params["w_hwio"].shape[-1]
    hidden = params["w1"].shape[-1]
    HW = H * W
    N = B * HW
    k = int(Cout * 0.7)

    # lane-dense padded channel sizes
    Cpi = _round_up(Cin, 128)
    Cpo = _round_up(Cout, 128)
    Hdp = _round_up(hidden, 128)

    tm_rows = _choose_row_tile(H, W)
    TM = tm_rows * W
    n_m = H // tm_rows

    f32 = jnp.float32
    bf16 = jnp.bfloat16

    # glue: NCHW -> NHWC, pad channels to 128 lanes, pad spatial for 3x3 conv,
    # activations / conv weights in bf16 for the MXU.
    x_nhwc = jnp.transpose(x_nchw, (0, 2, 3, 1)).astype(f32)
    xpad = jnp.pad(_pad_to(x_nhwc, (B, H, W, Cpi)),
                   ((0, 0), (1, 1), (1, 1), (0, 0))).astype(bf16)
    # per-tap weight layout (9, Cpi, Cpo) for the accumulating tap matmuls
    wconv = _pad_to(params["w_hwio"].astype(f32),
                    (3, 3, Cpi, Cpo)).reshape(9, Cpi, Cpo).astype(bf16)
    bconv = _pad_to(params["bconv"].astype(f32), (1, Cpo))
    gamma = _pad_to(params["gamma"].astype(f32), (1, Cpo))
    beta = _pad_to(params["beta"].astype(f32), (1, Cpo))
    w1 = _pad_to(params["w1"].astype(f32), (Cpi, Hdp))
    w2 = _pad_to(params["w2"].astype(f32), (Hdp, Cpo))
    b2 = _pad_to(params["b2"].astype(f32), (1, Cpo))

    vmem_limit = _pick_vmem_limit_bytes()
    cp_par = pltpu.CompilerParams(
        dimension_semantics=("parallel", "arbitrary"),
        vmem_limit_bytes=vmem_limit)
    cp_seq = pltpu.CompilerParams(
        dimension_semantics=("arbitrary",),
        vmem_limit_bytes=vmem_limit)

    # ---- pass 1: conv + per-sample stats, tiled over (batch, row-block) ------
    kern1 = functools.partial(conv_stats_kernel, tm_rows=tm_rows)
    conv_out, csum, csumsq, xsum = pl.pallas_call(
        kern1,
        grid=(B, n_m),
        in_specs=[
            # whole padded image per sample; index constant in m => one DMA / b
            pl.BlockSpec((1, H + 2, W + 2, Cpi), lambda b, m: (b, 0, 0, 0)),
            pl.BlockSpec((9, Cpi, Cpo), lambda b, m: (0, 0, 0)),
            pl.BlockSpec((1, Cpo), lambda b, m: (0, 0)),
        ],
        out_specs=[
            pl.BlockSpec((1, TM, Cpo), lambda b, m: (b, m, 0)),
            pl.BlockSpec((1, 1, Cpo), lambda b, m: (b, 0, 0)),   # accum over m
            pl.BlockSpec((1, 1, Cpo), lambda b, m: (b, 0, 0)),   # accum over m
            pl.BlockSpec((1, 1, Cpi), lambda b, m: (b, 0, 0)),   # accum over m
        ],
        out_shape=[
            jax.ShapeDtypeStruct((B, HW, Cpo), bf16),            # bf16 conv
            jax.ShapeDtypeStruct((B, 1, Cpo), f32),
            jax.ShapeDtypeStruct((B, 1, Cpo), f32),
            jax.ShapeDtypeStruct((B, 1, Cpi), f32),
        ],
        compiler_params=cp_par,
    )(xpad, wconv, bconv)

    # ---- pass 2: MaskBlock + BN stat finalize (tiny) --------------------------
    kern2 = functools.partial(mask_bn_stats_kernel,
                              n_total=N, hw=HW, c_out=Cout, k=k)
    score, mb, lasso, scale, shift = pl.pallas_call(
        kern2,
        grid=(1,),
        in_specs=[
            pl.BlockSpec((B, 1, Cpi), lambda i: (0, 0, 0)),   # xsum
            pl.BlockSpec((Cpi, Hdp), lambda i: (0, 0)),       # w1
            pl.BlockSpec((Hdp, Cpo), lambda i: (0, 0)),       # w2
            pl.BlockSpec((1, Cpo), lambda i: (0, 0)),         # b2
            pl.BlockSpec((B, 1, Cpo), lambda i: (0, 0, 0)),   # csum
            pl.BlockSpec((B, 1, Cpo), lambda i: (0, 0, 0)),   # csumsq
            pl.BlockSpec((1, Cpo), lambda i: (0, 0)),         # gamma
            pl.BlockSpec((1, Cpo), lambda i: (0, 0)),         # beta
        ],
        out_specs=[
            pl.BlockSpec((B, Cpo), lambda i: (0, 0)),         # masked_score
            pl.BlockSpec((B, Cpo), lambda i: (0, 0)),         # mask_before
            pl.BlockSpec((B, 1), lambda i: (0, 0)),           # lasso
            pl.BlockSpec((1, Cpo), lambda i: (0, 0)),         # BN scale
            pl.BlockSpec((1, Cpo), lambda i: (0, 0)),         # BN shift
        ],
        out_shape=[
            jax.ShapeDtypeStruct((B, Cpo), f32),
            jax.ShapeDtypeStruct((B, Cpo), f32),
            jax.ShapeDtypeStruct((B, 1), f32),
            jax.ShapeDtypeStruct((1, Cpo), f32),
            jax.ShapeDtypeStruct((1, Cpo), f32),
        ],
        compiler_params=cp_seq,
    )(xsum, w1, w2, b2, csum, csumsq, gamma, beta)

    # ---- pass 3: BN + ReLU + avg pool + masking, NCHW-layout writeback --------
    # (If DMA is still exposed at real sizes, add pipeline_mode=pl.Buffered(3)
    #  on the conv input spec — check VMEM headroom on v7x first.)
    score3 = score.reshape(B, 1, Cpo)
    kern3 = functools.partial(bn_relu_mask_kernel, c_out=Cout, inv_hw=1.0 / HW)
    out_bchw, avg_p = pl.pallas_call(
        kern3,
        grid=(B, n_m),
        in_specs=[
            pl.BlockSpec((1, TM, Cpo), lambda b, m: (b, m, 0)),
            pl.BlockSpec((1, Cpo), lambda b, m: (0, 0)),
            pl.BlockSpec((1, Cpo), lambda b, m: (0, 0)),
            pl.BlockSpec((1, 1, Cpo), lambda b, m: (b, 0, 0)),
        ],
        out_specs=[
            pl.BlockSpec((1, Cout, TM), lambda b, m: (b, 0, m)),  # NCHW tiles
            pl.BlockSpec((1, 1, Cpo), lambda b, m: (b, 0, 0)),    # accum over m
        ],
        out_shape=[
            jax.ShapeDtypeStruct((B, Cout, HW), f32),
            jax.ShapeDtypeStruct((B, 1, Cpo), f32),
        ],
        compiler_params=cp_par,
    )(conv_out, scale, shift, score3)

    out_nchw = out_bchw.reshape(B, Cout, H, W)     # free reshape, no transpose
    masked_score = score[:, :Cout]
    mask_before = mb[:, :Cout]
    lasso_v = lasso.reshape(B)
    avg_fea = avg_p[:, 0, :Cout].reshape(B, Cout, 1, 1)

    return [out_nchw,
            mask_list + [masked_score],
            lasso_list + [lasso_v],
            mb_list + [mask_before],
            avg_list + [avg_fea]]


# ----------------------------------------------------------------------------
# Pure-JAX reference (correctness check only).  Activations / conv weights are
# pre-rounded to bf16 and the conv intermediate is rounded to bf16 (stats
# computed pre-rounding) to mirror the kernel's storage precision.
# ----------------------------------------------------------------------------
def reference_forward(params, x_nchw):
    f32 = jnp.float32
    x = jnp.transpose(x_nchw, (0, 2, 3, 1)).astype(f32)      # NHWC
    xb = x.astype(jnp.bfloat16).astype(f32)
    wb = params["w_hwio"].astype(jnp.bfloat16).astype(f32)
    B, H, W, Cin = x.shape
    Cout = params["w_hwio"].shape[-1]
    # MaskBlock
    x_avg = jnp.mean(xb, axis=(1, 2))
    hdn = jax.nn.relu(x_avg @ params["w1"])
    y = hdn @ params["w2"] + params["b2"]
    mb = jax.nn.sigmoid(y)
    lasso = jnp.mean(mb, axis=-1)
    k = int(Cout * 0.7)
    s = jnp.flip(jnp.sort(mb, axis=-1), axis=-1)
    thred = s[:, k:k + 1]
    mask = (mb > thred).astype(f32)
    masked = mb * mask
    # conv + BN(train) + relu
    conv = jax.lax.conv_general_dilated(
        xb, wb, (1, 1), "SAME",
        dimension_numbers=("NHWC", "HWIO", "NHWC")) + params["bconv"]
    mean = jnp.mean(conv, axis=(0, 1, 2))
    var = jnp.mean((conv - mean) ** 2, axis=(0, 1, 2))
    conv_q = conv.astype(jnp.bfloat16).astype(f32)            # bf16 storage
    bn = (conv_q - mean) * jax.lax.rsqrt(var + 1e-5) * params["gamma"] + params["beta"]
    relu = jax.nn.relu(bn)
    avg_fea = jnp.mean(relu, axis=(1, 2)).reshape(B, Cout, 1, 1)
    out = relu * masked[:, None, None, :]
    return (jnp.transpose(out, (0, 3, 1, 2)), masked, lasso, mb, avg_fea)


# ----------------------------------------------------------------------------
def init_params(key, cin, cout):
    # out_channels < 80  => squeeze_rate = 1  => hidden = cout
    hidden = cout
    k1, k2, k3, k4 = jax.random.split(key, 4)
    w1 = jax.random.normal(k1, (cin, hidden), jnp.float32) * jnp.sqrt(2.0 / cin)
    w2 = jax.random.normal(k2, (hidden, cout), jnp.float32) * jnp.sqrt(2.0 / hidden)
    b2 = jnp.ones((1, cout), jnp.float32)                    # fc2.bias := 1.0
    w_hwio = jax.random.normal(k3, (3, 3, cin, cout), jnp.float32) * jnp.sqrt(2.0 / (9 * cin))
    bconv = jax.random.normal(k4, (1, cout), jnp.float32) * 0.1
    gamma = jnp.ones((1, cout), jnp.float32)                  # BatchNorm2d init
    beta = jnp.zeros((1, cout), jnp.float32)
    return dict(w1=w1, w2=w2, b2=b2, w_hwio=w_hwio,
                bconv=bconv, gamma=gamma, beta=beta)


if __name__ == "__main__":
    B, Cin, Cout, H, W = 2, 4, 8, 16, 16
    key = jax.random.PRNGKey(0)
    kx, kp = jax.random.split(key)
    x = jax.random.normal(kx, (B, Cin, H, W), jnp.float32)
    params = init_params(kp, Cin, Cout)

    state = [x, [], [], [], []]
    out_state = mask_vgg_block_forward(params, state)
    out, mask_l, lasso_l, mb_l, avg_l = out_state
    jax.block_until_ready(out)

    # correctness check vs. pure-JAX reference
    r_out, r_masked, r_lasso, r_mb, r_avg = reference_forward(params, x)
    assert jnp.allclose(out, r_out, atol=2e-2, rtol=2e-2)
    assert jnp.allclose(mask_l[0], r_masked, atol=1e-4, rtol=1e-4)
    assert jnp.allclose(lasso_l[0], r_lasso, atol=1e-4, rtol=1e-4)
    assert jnp.allclose(mb_l[0], r_mb, atol=1e-4, rtol=1e-4)
    assert jnp.allclose(avg_l[0], r_avg, atol=2e-2, rtol=2e-2)

    print("KERNEL_OK")
</pallas_src>

<mosaic_0001>
module attributes {stable_mosaic.version = 11 : i64} {
  func.func @conv_stats_kernel(%arg0: i32, %arg1: i32, %arg2: memref<1x18x18x128xbf16, #tpu.memory_space<vmem>>, %arg3: memref<9x128x128xbf16, #tpu.memory_space<vmem>>, %arg4: memref<1x128xf32, #tpu.memory_space<vmem>>, %arg5: memref<1x128x128xbf16, #tpu.memory_space<vmem>>, %arg6: memref<1x1x128xf32, #tpu.memory_space<vmem>>, %arg7: memref<1x1x128xf32, #tpu.memory_space<vmem>>, %arg8: memref<1x1x128xf32, #tpu.memory_space<vmem>>) attributes {dimension_semantics = [#tpu.dimension_semantics<parallel>, #tpu.dimension_semantics<arbitrary>], iteration_bounds = array<i64: 2, 2>, scalar_prefetch = 0 : i64, scratch_operands = 0 : i64, tpu.core_type = #tpu.core_type<tc>, window_params = [{transform_indices = @transform_0, window_bounds = array<i64: 1, 18, 18, 128>}, {pipeline_mode = #tpu.pipeline_mode<synchronous>, transform_indices = @transform_1, window_bounds = array<i64: 9, 128, 128>}, {pipeline_mode = #tpu.pipeline_mode<synchronous>, transform_indices = @transform_2, window_bounds = array<i64: 1, 128>}, {transform_indices = @transform_3, window_bounds = array<i64: 1, 128, 128>}, {transform_indices = @transform_4, window_bounds = array<i64: 1, 1, 128>}, {transform_indices = @transform_5, window_bounds = array<i64: 1, 1, 128>}, {transform_indices = @transform_6, window_bounds = array<i64: 1, 1, 128>}]} {
    %c0_i32 = arith.constant 0 : i32
    %0 = arith.cmpi eq, %arg1, %c0_i32 : i32
    %1 = arith.extui %0 : i1 to i32
    %c0_i32_0 = arith.constant 0 : i32
    %2 = arith.cmpi ne, %1, %c0_i32_0 : i32
    scf.if %2 {
      %cst_88 = arith.constant 0.000000e+00 : f32
      %111 = vector.broadcast %cst_88 : f32 to vector<1x1x128xf32>
      %c0_89 = arith.constant 0 : index
      %c0_90 = arith.constant 0 : index
      %c0_91 = arith.constant 0 : index
      %112 = vector.load %arg6[%c0_89, %c0_90, %c0_91] : memref<1x1x128xf32, #tpu.memory_space<vmem>>, vector<1x1x128xf32>
      tpu.vector_store %arg6[%c0_89, %c0_90, %c0_91], %111 {strides = array<i32>} : memref<1x1x128xf32, #tpu.memory_space<vmem>>, vector<1x1x128xf32>,
      %cst_92 = arith.constant 0.000000e+00 : f32
      %113 = vector.broadcast %cst_92 : f32 to vector<1x1x128xf32>
      %c0_93 = arith.constant 0 : index
      %c0_94 = arith.constant 0 : index
      %c0_95 = arith.constant 0 : index
      %114 = vector.load %arg7[%c0_93, %c0_94, %c0_95] : memref<1x1x128xf32, #tpu.memory_space<vmem>>, vector<1x1x128xf32>
      tpu.vector_store %arg7[%c0_93, %c0_94, %c0_95], %113 {strides = array<i32>} : memref<1x1x128xf32, #tpu.memory_space<vmem>>, vector<1x1x128xf32>,
      %cst_96 = arith.constant 0.000000e+00 : f32
      %115 = vector.broadcast %cst_96 : f32 to vector<1x1x128xf32>
      %c0_97 = arith.constant 0 : index
      %c0_98 = arith.constant 0 : index
      %c0_99 = arith.constant 0 : index
      %116 = vector.load %arg8[%c0_97, %c0_98, %c0_99] : memref<1x1x128xf32, #tpu.memory_space<vmem>>, vector<1x1x128xf32>
      tpu.vector_store %arg8[%c0_97, %c0_98, %c0_99], %115 {strides = array<i32>} : memref<1x1x128xf32, #tpu.memory_space<vmem>>, vector<1x1x128xf32>,
    } else {
    }
    %c8_i32 = arith.constant 8 : i32
    %3 = arith.muli %arg1, %c8_i32 : i32
    %4 = tpu.assume_multiple %3, 8 : i32
    %cst = arith.constant 0.000000e+00 : f32
    %5 = vector.broadcast %cst : f32 to vector<128x128xf32>
    %c0_i32_1 = arith.constant 0 : i32
    %6 = arith.addi %4, %c0_i32_1 : i32
    %c0 = arith.constant 0 : index
    %7 = arith.index_cast %6 : i32 to index
    %c0_2 = arith.constant 0 : index
    %c0_3 = arith.constant 0 : index
    %8 = vector.load %arg2[%c0, %7, %c0_2, %c0_3] : memref<1x18x18x128xbf16, #tpu.memory_space<vmem>>, vector<1x8x16x128xbf16>
    %9 = vector.shape_cast %8 : vector<1x8x16x128xbf16> to vector<128x128xbf16>
    %c0_4 = arith.constant 0 : index
    %c0_5 = arith.constant 0 : index
    %c0_6 = arith.constant 0 : index
    %10 = vector.load %arg3[%c0_4, %c0_5, %c0_6] : memref<9x128x128xbf16, #tpu.memory_space<vmem>>, vector<1x128x128xbf16>
    %11 = vector.shape_cast %10 : vector<1x128x128xbf16> to vector<128x128xbf16>
    %cst_7 = arith.constant dense<0.000000e+00> : vector<128x128xf32>
    %12 = tpu.matmul %9, %11, %cst_7 {dimension_numbers = #tpu.dot_dimension_numbers<[1], [0], [0], [1], [0, 0, 1, 1], [], []>} : vector<128x128xbf16>, vector<128x128xbf16>, vector<128x128xf32> -> vector<128x128xf32>
    %13 = arith.addf %5, %12 : vector<128x128xf32>
    %c0_i32_8 = arith.constant 0 : i32
    %14 = arith.addi %4, %c0_i32_8 : i32
    %c0_9 = arith.constant 0 : index
    %15 = arith.index_cast %14 : i32 to index
    %c1 = arith.constant 1 : index
    %c0_10 = arith.constant 0 : index
    %16 = vector.load %arg2[%c0_9, %15, %c1, %c0_10] : memref<1x18x18x128xbf16, #tpu.memory_space<vmem>>, vector<1x8x16x128xbf16>
    %17 = vector.shape_cast %16 : vector<1x8x16x128xbf16> to vector<128x128xbf16>
    %c1_11 = arith.constant 1 : index
    %c0_12 = arith.constant 0 : index
    %c0_13 = arith.constant 0 : index
    %18 = vector.load %arg3[%c1_11, %c0_12, %c0_13] : memref<9x128x128xbf16, #tpu.memory_space<vmem>>, vector<1x128x128xbf16>
    %19 = vector.shape_cast %18 : vector<1x128x128xbf16> to vector<128x128xbf16>
    %cst_14 = arith.constant dense<0.000000e+00> : vector<128x128xf32>
    %20 = tpu.matmul %17, %19, %cst_14 {dimension_numbers = #tpu.dot_dimension_numbers<[1], [0], [0], [1], [0, 0, 1, 1], [], []>} : vector<128x128xbf16>, vector<128x128xbf16>, vector<128x128xf32> -> vector<128x128xf32>
    %21 = arith.addf %13, %20 : vector<128x128xf32>
    %c0_i32_15 = arith.constant 0 : i32
    %22 = arith.addi %4, %c0_i32_15 : i32
    %c0_16 = arith.constant 0 : index
    %23 = arith.index_cast %22 : i32 to index
    %c2 = arith.constant 2 : index
    %c0_17 = arith.constant 0 : index
    %24 = vector.load %arg2[%c0_16, %23, %c2, %c0_17] : memref<1x18x18x128xbf16, #tpu.memory_space<vmem>>, vector<1x8x16x128xbf16>
    %25 = vector.shape_cast %24 : vector<1x8x16x128xbf16> to vector<128x128xbf16>
    %c2_18 = arith.constant 2 : index
    %c0_19 = arith.constant 0 : index
    %c0_20 = arith.constant 0 : index
    %26 = vector.load %arg3[%c2_18, %c0_19, %c0_20] : memref<9x128x128xbf16, #tpu.memory_space<vmem>>, vector<1x128x128xbf16>
    %27 = vector.shape_cast %26 : vector<1x128x128xbf16> to vector<128x128xbf16>
    %cst_21 = arith.constant dense<0.000000e+00> : vector<128x128xf32>
    %28 = tpu.matmul %25, %27, %cst_21 {dimension_numbers = #tpu.dot_dimension_numbers<[1], [0], [0], [1], [0, 0, 1, 1], [], []>} : vector<128x128xbf16>, vector<128x128xbf16>, vector<128x128xf32> -> vector<128x128xf32>
    %29 = arith.addf %21, %28 : vector<128x128xf32>
    %c1_i32 = arith.constant 1 : i32
    %30 = arith.addi %4, %c1_i32 : i32
    %c0_22 = arith.constant 0 : index
    %31 = arith.index_cast %30 : i32 to index
    %c0_23 = arith.constant 0 : index
    %c0_24 = arith.constant 0 : index
    %32 = vector.load %arg2[%c0_22, %31, %c0_23, %c0_24] : memref<1x18x18x128xbf16, #tpu.memory_space<vmem>>, vector<1x8x16x128xbf16>
    %33 = vector.shape_cast %32 : vector<1x8x16x128xbf16> to vector<128x128xbf16>
    %c3 = arith.constant 3 : index
    %c0_25 = arith.constant 0 : index
    %c0_26 = arith.constant 0 : index
    %34 = vector.load %arg3[%c3, %c0_25, %c0_26] : memref<9x128x128xbf16, #tpu.memory_space<vmem>>, vector<1x128x128xbf16>
    %35 = vector.shape_cast %34 : vector<1x128x128xbf16> to vector<128x128xbf16>
    %cst_27 = arith.constant dense<0.000000e+00> : vector<128x128xf32>
    %36 = tpu.matmul %33, %35, %cst_27 {dimension_numbers = #tpu.dot_dimension_numbers<[1], [0], [0], [1], [0, 0, 1, 1], [], []>} : vector<128x128xbf16>, vector<128x128xbf16>, vector<128x128xf32> -> vector<128x128xf32>
    %37 = arith.addf %29, %36 : vector<128x128xf32>
    %c1_i32_28 = arith.constant 1 : i32
    %38 = arith.addi %4, %c1_i32_28 : i32
    %c0_29 = arith.constant 0 : index
    %39 = arith.index_cast %38 : i32 to index
    %c1_30 = arith.constant 1 : index
    %c0_31 = arith.constant 0 : index
    %40 = vector.load %arg2[%c0_29, %39, %c1_30, %c0_31] : memref<1x18x18x128xbf16, #tpu.memory_space<vmem>>, vector<1x8x16x128xbf16>
    %41 = vector.shape_cast %40 : vector<1x8x16x128xbf16> to vector<128x128xbf16>
    %c0_32 = arith.constant 0 : index
    %c0_33 = arith.constant 0 : index
    %c0_34 = arith.constant 0 : index
    %42 = vector.load %arg8[%c0_32, %c0_33, %c0_34] : memref<1x1x128xf32, #tpu.memory_space<vmem>>, vector<1x1x128xf32>
    %43 = vector.shape_cast %42 : vector<1x1x128xf32> to vector<1x128xf32>
    %44 = arith.extf %41 : vector<128x128xbf16> to vector<128x128xf32>
    %cst_35 = arith.constant dense<0.000000e+00> : vector<128xf32>
    %45 = vector.multi_reduction <add>, %44, %cst_35 [0] : vector<128x128xf32> to vector<128xf32>
    %46 = vector.shape_cast %45 : vector<128xf32> to vector<1x128xf32>
    %47 = arith.addf %43, %46 : vector<1x128xf32>
    %c0_36 = arith.constant 0 : index
    %c0_37 = arith.constant 0 : index
    %c0_38 = arith.constant 0 : index
    %48 = vector.load %arg8[%c0_36, %c0_37, %c0_38] : memref<1x1x128xf32, #tpu.memory_space<vmem>>, vector<1x1x128xf32>
    %49 = vector.shape_cast %48 : vector<1x1x128xf32> to vector<1x128xf32>
    %50 = vector.shape_cast %47 : vector<1x128xf32> to vector<1x1x128xf32>
    tpu.vector_store %arg8[%c0_36, %c0_37, %c0_38], %50 {strides = array<i32>} : memref<1x1x128xf32, #tpu.memory_space<vmem>>, vector<1x1x128xf32>,
    %c4 = arith.constant 4 : index
    %c0_39 = arith.constant 0 : index
    %c0_40 = arith.constant 0 : index
    %51 = vector.load %arg3[%c4, %c0_39, %c0_40] : memref<9x128x128xbf16, #tpu.memory_space<vmem>>, vector<1x128x128xbf16>
    %52 = vector.shape_cast %51 : vector<1x128x128xbf16> to vector<128x128xbf16>
    %cst_41 = arith.constant dense<0.000000e+00> : vector<128x128xf32>
    %53 = tpu.matmul %41, %52, %cst_41 {dimension_numbers = #tpu.dot_dimension_numbers<[1], [0], [0], [1], [0, 0, 1, 1], [], []>} : vector<128x128xbf16>, vector<128x128xbf16>, vector<128x128xf32> -> vector<128x128xf32>
    %54 = arith.addf %37, %53 : vector<128x128xf32>
    %c1_i32_42 = arith.constant 1 : i32
    %55 = arith.addi %4, %c1_i32_42 : i32
    %c0_43 = arith.constant 0 : index
    %56 = arith.index_cast %55 : i32 to index
    %c2_44 = arith.constant 2 : index
    %c0_45 = arith.constant 0 : index
    %57 = vector.load %arg2[%c0_43, %56, %c2_44, %c0_45] : memref<1x18x18x128xbf16, #tpu.memory_space<vmem>>, vector<1x8x16x128xbf16>
    %58 = vector.shape_cast %57 : vector<1x8x16x128xbf16> to vector<128x128xbf16>
    %c5 = arith.constant 5 : index
    %c0_46 = arith.constant 0 : index
    %c0_47 = arith.constant 0 : index
    %59 = vector.load %arg3[%c5, %c0_46, %c0_47] : memref<9x128x128xbf16, #tpu.memory_space<vmem>>, vector<1x128x128xbf16>
    %60 = vector.shape_cast %59 : vector<1x128x128xbf16> to vector<128x128xbf16>
    %cst_48 = arith.constant dense<0.000000e+00> : vector<128x128xf32>
    %61 = tpu.matmul %58, %60, %cst_48 {dimension_numbers = #tpu.dot_dimension_numbers<[1], [0], [0], [1], [0, 0, 1, 1], [], []>} : vector<128x128xbf16>, vector<128x128xbf16>, vector<128x128xf32> -> vector<128x128xf32>
    %62 = arith.addf %54, %61 : vector<128x128xf32>
    %c2_i32 = arith.constant 2 : i32
    %63 = arith.addi %4, %c2_i32 : i32
    %c0_49 = arith.constant 0 : index
    %64 = arith.index_cast %63 : i32 to index
    %c0_50 = arith.constant 0 : index
    %c0_51 = arith.constant 0 : index
    %65 = vector.load %arg2[%c0_49, %64, %c0_50, %c0_51] : memref<1x18x18x128xbf16, #tpu.memory_space<vmem>>, vector<1x8x16x128xbf16>
    %66 = vector.shape_cast %65 : vector<1x8x16x128xbf16> to vector<128x128xbf16>
    %c6 = arith.constant 6 : index
    %c0_52 = arith.constant 0 : index
    %c0_53 = arith.constant 0 : index
    %67 = vector.load %arg3[%c6, %c0_52, %c0_53] : memref<9x128x128xbf16, #tpu.memory_space<vmem>>, vector<1x128x128xbf16>
    %68 = vector.shape_cast %67 : vector<1x128x128xbf16> to vector<128x128xbf16>
    %cst_54 = arith.constant dense<0.000000e+00> : vector<128x128xf32>
    %69 = tpu.matmul %66, %68, %cst_54 {dimension_numbers = #tpu.dot_dimension_numbers<[1], [0], [0], [1], [0, 0, 1, 1], [], []>} : vector<128x128xbf16>, vector<128x128xbf16>, vector<128x128xf32> -> vector<128x128xf32>
    %70 = arith.addf %62, %69 : vector<128x128xf32>
    %c2_i32_55 = arith.constant 2 : i32
    %71 = arith.addi %4, %c2_i32_55 : i32
    %c0_56 = arith.constant 0 : index
    %72 = arith.index_cast %71 : i32 to index
    %c1_57 = arith.constant 1 : index
    %c0_58 = arith.constant 0 : index
    %73 = vector.load %arg2[%c0_56, %72, %c1_57, %c0_58] : memref<1x18x18x128xbf16, #tpu.memory_space<vmem>>, vector<1x8x16x128xbf16>
    %74 = vector.shape_cast %73 : vector<1x8x16x128xbf16> to vector<128x128xbf16>
    %c7 = arith.constant 7 : index
    %c0_59 = arith.constant 0 : index
    %c0_60 = arith.constant 0 : index
    %75 = vector.load %arg3[%c7, %c0_59, %c0_60] : memref<9x128x128xbf16, #tpu.memory_space<vmem>>, vector<1x128x128xbf16>
    %76 = vector.shape_cast %75 : vector<1x128x128xbf16> to vector<128x128xbf16>
    %cst_61 = arith.constant dense<0.000000e+00> : vector<128x128xf32>
    %77 = tpu.matmul %74, %76, %cst_61 {dimension_numbers = #tpu.dot_dimension_numbers<[1], [0], [0], [1], [0, 0, 1, 1], [], []>} : vector<128x128xbf16>, vector<128x128xbf16>, vector<128x128xf32> -> vector<128x128xf32>
    %78 = arith.addf %70, %77 : vector<128x128xf32>
    %c2_i32_62 = arith.constant 2 : i32
    %79 = arith.addi %4, %c2_i32_62 : i32
    %c0_63 = arith.constant 0 : index
    %80 = arith.index_cast %79 : i32 to index
    %c2_64 = arith.constant 2 : index
    %c0_65 = arith.constant 0 : index
    %81 = vector.load %arg2[%c0_63, %80, %c2_64, %c0_65] : memref<1x18x18x128xbf16, #tpu.memory_space<vmem>>, vector<1x8x16x128xbf16>
    %82 = vector.shape_cast %81 : vector<1x8x16x128xbf16> to vector<128x128xbf16>
    %c8 = arith.constant 8 : index
    %c0_66 = arith.constant 0 : index
    %c0_67 = arith.constant 0 : index
    %83 = vector.load %arg3[%c8, %c0_66, %c0_67] : memref<9x128x128xbf16, #tpu.memory_space<vmem>>, vector<1x128x128xbf16>
    %84 = vector.shape_cast %83 : vector<1x128x128xbf16> to vector<128x128xbf16>
    %cst_68 = arith.constant dense<0.000000e+00> : vector<128x128xf32>
    %85 = tpu.matmul %82, %84, %cst_68 {dimension_numbers = #tpu.dot_dimension_numbers<[1], [0], [0], [1], [0, 0, 1, 1], [], []>} : vector<128x128xbf16>, vector<128x128xbf16>, vector<128x128xf32> -> vector<128x128xf32>
    %86 = arith.addf %78, %85 : vector<128x128xf32>
    %c0_69 = arith.constant 0 : index
    %c0_70 = arith.constant 0 : index
    %87 = vector.load %arg4[%c0_69, %c0_70] : memref<1x128xf32, #tpu.memory_space<vmem>>, vector<1x128xf32>
    %88 = vector.broadcast %87 : vector<1x128xf32> to vector<128x128xf32>
    %89 = arith.addf %86, %88 : vector<128x128xf32>
    %c0_71 = arith.constant 0 : index
    %c0_72 = arith.constant 0 : index
    %c0_73 = arith.constant 0 : index
    %90 = vector.load %arg6[%c0_71, %c0_72, %c0_73] : memref<1x1x128xf32, #tpu.memory_space<vmem>>, vector<1x1x128xf32>
    %91 = vector.shape_cast %90 : vector<1x1x128xf32> to vector<1x128xf32>
    %cst_74 = arith.constant dense<0.000000e+00> : vector<128xf32>
    %92 = vector.multi_reduction <add>, %89, %cst_74 [0] : vector<128x128xf32> to vector<128xf32>
    %93 = vector.shape_cast %92 : vector<128xf32> to vector<1x128xf32>
    %94 = arith.addf %91, %93 : vector<1x128xf32>
    %c0_75 = arith.constant 0 : index
    %c0_76 = arith.constant 0 : index
    %c0_77 = arith.constant 0 : index
    %95 = vector.load %arg6[%c0_75, %c0_76, %c0_77] : memref<1x1x128xf32, #tpu.memory_space<vmem>>, vector<1x1x128xf32>
    %96 = vector.shape_cast %95 : vector<1x1x128xf32> to vector<1x128xf32>
    %97 = vector.shape_cast %94 : vector<1x128xf32> to vector<1x1x128xf32>
    tpu.vector_store %arg6[%c0_75, %c0_76, %c0_77], %97 {strides = array<i32>} : memref<1x1x128xf32, #tpu.memory_space<vmem>>, vector<1x1x128xf32>,
    %c0_78 = arith.constant 0 : index
    %c0_79 = arith.constant 0 : index
    %c0_80 = arith.constant 0 : index
    %98 = vector.load %arg7[%c0_78, %c0_79, %c0_80] : memref<1x1x128xf32, #tpu.memory_space<vmem>>, vector<1x1x128xf32>
    %99 = vector.shape_cast %98 : vector<1x1x128xf32> to vector<1x128xf32>
    %100 = arith.mulf %89, %89 : vector<128x128xf32>
    %cst_81 = arith.constant dense<0.000000e+00> : vector<128xf32>
    %101 = vector.multi_reduction <add>, %100, %cst_81 [0] : vector<128x128xf32> to vector<128xf32>
    %102 = vector.shape_cast %101 : vector<128xf32> to vector<1x128xf32>
    %103 = arith.addf %99, %102 : vector<1x128xf32>
    %c0_82 = arith.constant 0 : index
    %c0_83 = arith.constant 0 : index
    %c0_84 = arith.constant 0 : index
    %104 = vector.load %arg7[%c0_82, %c0_83, %c0_84] : memref<1x1x128xf32, #tpu.memory_space<vmem>>, vector<1x1x128xf32>
    %105 = vector.shape_cast %104 : vector<1x1x128xf32> to vector<1x128xf32>
    %106 = vector.shape_cast %103 : vector<1x128xf32> to vector<1x1x128xf32>
    tpu.vector_store %arg7[%c0_82, %c0_83, %c0_84], %106 {strides = array<i32>} : memref<1x1x128xf32, #tpu.memory_space<vmem>>, vector<1x1x128xf32>,
    %107 = arith.truncf %89 : vector<128x128xf32> to vector<128x128xbf16>
    %c0_85 = arith.constant 0 : index
    %c0_86 = arith.constant 0 : index
    %c0_87 = arith.constant 0 : index
    %108 = vector.load %arg5[%c0_85, %c0_86, %c0_87] : memref<1x128x128xbf16, #tpu.memory_space<vmem>>, vector<1x128x128xbf16>
    %109 = vector.shape_cast %108 : vector<1x128x128xbf16> to vector<128x128xbf16>
    %110 = vector.shape_cast %107 : vector<128x128xbf16> to vector<1x128x128xbf16>
    tpu.vector_store %arg5[%c0_85, %c0_86, %c0_87], %110 {strides = array<i32>} : memref<1x128x128xbf16, #tpu.memory_space<vmem>>, vector<1x128x128xbf16>,
    return
  }
  func.func @transform_0(%arg0: i32, %arg1: i32) -> (i32, i32, i32, i32) {
    %c0_i32 = arith.constant 0 : i32
    %c0_i32_0 = arith.constant 0 : i32
    %c0_i32_1 = arith.constant 0 : i32
    %c0_i32_2 = arith.constant 0 : i32
    return %arg0, %c0_i32, %c0_i32_0, %c0_i32_1 : i32, i32, i32, i32
  }
  func.func @transform_1(%arg0: i32, %arg1: i32) -> (i32, i32, i32) {
    %c0_i32 = arith.constant 0 : i32
    %c0_i32_0 = arith.constant 0 : i32
    %c0_i32_1 = arith.constant 0 : i32
    %c0_i32_2 = arith.constant 0 : i32
    return %c0_i32, %c0_i32_0, %c0_i32_1 : i32, i32, i32
  }
  func.func @transform_2(%arg0: i32, %arg1: i32) -> (i32, i32) {
    %c0_i32 = arith.constant 0 : i32
    %c0_i32_0 = arith.constant 0 : i32
    %c0_i32_1 = arith.constant 0 : i32
    return %c0_i32, %c0_i32_0 : i32, i32
  }
  func.func @transform_3(%arg0: i32, %arg1: i32) -> (i32, i32, i32) {
    %c0_i32 = arith.constant 0 : i32
    %c0_i32_0 = arith.constant 0 : i32
    return %arg0, %arg1, %c0_i32 : i32, i32, i32
  }
  func.func @transform_4(%arg0: i32, %arg1: i32) -> (i32, i32, i32) {
    %c0_i32 = arith.constant 0 : i32
    %c0_i32_0 = arith.constant 0 : i32
    %c0_i32_1 = arith.constant 0 : i32
    return %arg0, %c0_i32, %c0_i32_0 : i32, i32, i32
  }
  func.func @transform_5(%arg0: i32, %arg1: i32) -> (i32, i32, i32) {
    %c0_i32 = arith.constant 0 : i32
    %c0_i32_0 = arith.constant 0 : i32
    %c0_i32_1 = arith.constant 0 : i32
    return %arg0, %c0_i32, %c0_i32_0 : i32, i32, i32
  }
  func.func @transform_6(%arg0: i32, %arg1: i32) -> (i32, i32, i32) {
    %c0_i32 = arith.constant 0 : i32
    %c0_i32_0 = arith.constant 0 : i32
    %c0_i32_1 = arith.constant 0 : i32
    return %arg0, %c0_i32, %c0_i32_0 : i32, i32, i32
  }
}

</mosaic_0001>

<bundles_post_ra>
// kernel: tpu_custom_call.1
= control target key start
LH: loop header
LB: loop body
LE: loop exit
PB: predicated region body
PF: predicated region fallthrough
CT: control target
= control target key end

     0   :  { %s6405_s0 = inlined_call_operand.vmem [shape: bf16[2,18,18,128], index: 0, kind: input, shape index: {}]   ;;  %s6406_s1 = inlined_call_operand.vmem [shape: bf16[9,128,128], index: 1, kind: input, shape index: {}]   ;;  %s6407_s2 = inlined_call_operand.vmem [shape: f32[1,128], index: 2, kind: input, shape index: {}]   ;;  %s6408_s3 = inlined_call_operand.hbm [shape: bf16[2,256,128], index: 3, kind: output, shape index: {0}]   ;;  %s6409_s4 = inlined_call_operand.hbm [shape: f32[2,1,128], index: 4, kind: output, shape index: {1}]   ;;  %s6410_s5 = inlined_call_operand.hbm [shape: f32[2,1,128], index: 5, kind: output, shape index: {2}]   ;;  %s6411_s6 = inlined_call_operand.hbm [shape: f32[2,1,128], index: 6, kind: output, shape index: {3}]  }
   0x1   :  { %6423 = sst [smem:[#allocation35_spill]] %s6405_s0 }
   0x2   :  { %6424 = sst [smem:[#allocation36_spill]] %s6406_s1 }
   0x3   :  { %12 = vsyncpa [#allocation3], 0 }
   0x4   :  { %14 = vsyncpa [#allocation3 + $0x1], 0 }
   0x5   :  { %15 = vsyncpa [#allocation5], 0 }
   0x6   :  { %17 = vsyncpa [#allocation5 + $0x1], 0 }
   0x7   :  { %18 = vsyncpa [#allocation8], 0 }
   0x8   :  { %20 = vsyncpa [#allocation8 + $0x1], 0  ;;  %s5047_s21 = smov 0   ;;  %s5049_s22 = smov 0  }
   0x9   :  { %s5051_s23 = smov 0   ;;  %s5053_s24 = smov 0  }
   0xa   :  { %s5055_s25 = smov 0   ;;  %s5057_s26 = smov 0  }
   0xb   :  { %s5059_s27 = smov 0   ;;  %s5061_s28 = smov 0  }
   0xc   :  { %s5063_s29 = smov 0   ;;  %s5065_s30 = smov 0  }
   0xd   :  { %s5067_s7 = smov 0  }
   0xe LB: > { %6425 = sst [smem:[#allocation12_spill]] %s4963_s21  ;;  %s6413_s8 = sadd.s32 4294967295, %s5003_s7   ;;  %s5003_s7 = sphi %s5067_s7, %s26_s7   ;;  %s4999_s30 = sphi %s5065_s30, %s6487_s30   ;;  %s4995_s29 = sphi %s5063_s29, %s6486_s29   ;;  %s4991_s28 = sphi %s5061_s28, %s6485_s28   ;;  %s4987_s27 = sphi %s5059_s27, %s6484_s27   ;;  %s4983_s26 = sphi %s5057_s26, %s6483_s26   ;;  %s4979_s25 = sphi %s5055_s25, %s6489_s25   ;;  %s4975_s24 = sphi %s5053_s24, %s6488_s24   ;;  %s4971_s23 = sphi %s5051_s23, %s6481_s23   ;;  %s4967_s22 = sphi %s5049_s22, %s6480_s22   ;;  %s4963_s21 = sphi %s5047_s21, %s6479_s21  }
   0xf   : > { %6426 = sst [smem:[#allocation13_spill]] %s4967_s22  ;;  %s6412_s9 = sadd.s32 4294967294, %s5003_s7  }
  0x10   : > { %6427 = sst [smem:[#allocation14_spill]] %s4971_s23  ;;  %s35_s10 = sadd.s32 1, %s4995_s29 }
  0x11   : > { %6428 = sst [smem:[#allocation15_spill]] %s4983_s26  ;;  %s38_s11 = sadd.s32 1, %s4999_s30 }
  0x12   : > { %6429 = sst [smem:[#allocation16_spill]] %s4995_s29  ;;  %p36_p0 = scmp.ge.s32.totalorder %s35_s10, 2 }
  0x13   : > { %6430 = sst [smem:[#allocation17_spill]] %s4999_s30  ;;  %s115_s12 = sadd.s32 1, %s4983_s26 }
  0x14   : > { %p125_p1 = scmp.ne.s32.totalorder %s4983_s26, %s4979_s25  ;;  %p5111_p2 = scmp.eq.s32.totalorder %s6413_s8, 3 }
  0x15   : > { %s6491_s10 = smov (%p36_p0, %s35_s10), 0  ;;  %s6493_s11 = smov (!%p36_p0, %s38_s11), %s4999_s30 }
  0x16   : > { %6432 = sst [smem:[#allocation18_spill]] %s6491_s10  ;;  %s111_s14 = ssub.s32 %s4995_s29, %s6491_s10 }
  0x17   : > { %p5122_p3 = por %p5111_p2, %p125_p1  ;;  %p40_p4 = scmp.ge.s32.totalorder %s6493_s11, 2 }
  0x18   : > { %p131_p5 = scmp.ne.s32.totalorder %s4979_s25, %s4975_s24  ;;  %p5130_p6 = scmp.eq.s32.totalorder %s6412_s9, 3 }
  0x19   : > { %s141_s17 = sadd.s32 1, %s4971_s23  ;;  %s6495_s11 = smov (%p40_p4, %s6493_s11), 0 }
  0x1a   : > { %6435 = sst [smem:[#allocation19_spill]] %s6495_s11  ;;  %p5139_p7 = por %p5130_p6, %p131_p5 }
  0x1b   : > { %p151_p8 = scmp.ne.s32.totalorder %s4971_s23, %s4967_s22  ;;  %s110_s19 = ssub.s32 %s4999_s30, %s6495_s11 }
  0x1c   : > { %s6436_s18 = scalar_select %p5139_p7, 1, 0 }
  0x1d   : > { %p157_p9 = scmp.ne.s32.totalorder %s4967_s22, %s4963_s21  ;;  %s112_s20 = sor.u32 %s111_s14, %s110_s19 }
  0x1e   : > { %p139_p10 = scmp.eq.s32.totalorder %s110_s19, 0  ;;  %p113_p11 = scmp.eq.s32.totalorder %s112_s20, 0 }
  0x1f   : > { %p5151_p12 = por %p151_p8, %p5111_p2  ;;  %p5163_p13 = por %p157_p9, %p5130_p6 }
  0x20   : > { %s5156_s8 = scalar_select %p139_p10, %s4971_s23, %s141_s17  }
  0x21   : > { %s5159_s10 = scalar_select %p113_p11, %s4983_s26, %s115_s12  }
  0x22   : > { %6438 = sst [smem:[#allocation20_spill]] %s5156_s8  ;;  %p3634_p0 = scmp.ge.s32.totalorder %s5003_s7, 1 }
  0x23   : > { %6439 = sst [smem:[#allocation21_spill]] %s5159_s10  ;;  %p242_p1 = scmp.lt.s32.totalorder %s5003_s7, 5 }
  0x24   : > { %s6440_s29 = scalar_select %p5163_p13, 1, 0 }
  0x25   : > { %p243_p4 = pnand %p3634_p0, %p242_p1 }
  0x27   : > { %246 = sbr.rel (%p243_p4) target bundleno = 531 (0x213), region = 32 }
  0x2c   : > { %s6419_s13 = sand.u32 1, %s4979_s25   ;;  %s5171_s14 = sand.u32 1, %s4967_s22  }
  0x2d   : > { %s3635_s12 = sshll.u32 %s6419_s13, 6  ;;  %p284_p2 = scmp.lt.s32.totalorder %s4991_s28, 1 }
  0x2e   : > { %s6441_s0 = sld [smem:[#allocation35_spill]]  ;;  %s5182_s30 = scalar_lea.vmem [#allocation2], %s3635_s12 }
  0x2f   : > { %s285_s16 = scalar_select %p284_p2, %s4991_s28, 1 }
  0x30   : > { %s5185_s10 = scalar_lea.vmem [#allocation4], %s5171_s14  ;;  %s5188_s26 = scalar_lea.vmem [#allocation6], %s5171_s14 }
  0x31   : > { %s4591_s17 = smul.u32 216, %s285_s16  ;;  %s5191_s8 = scalar_lea.vmem [#allocation7], %s5171_s14 }
  0x32   : > { %p3637_p5 = scmp.ne.s32.totalorder %s4987_s27, 0 }
  0x34   : > { %s5180_s11 = scalar_lea.vmem %s6441_s0, %s4591_s17  ;;  %294 = sbr.rel (%p3637_p5) target bundleno = 60 (0x3c), region = 36 }
  0x39   : > { %v5005_v0 = vmov 0.0  }
  0x3a   : > { %295 = vst [vmem:[%s5185_s10] sm:$0x1] %v5005_v0  ;;  %296 = vst [vmem:[%s5188_s26] sm:$0x1] %v5005_v0 }
  0x3b   : > { %297 = vst [vmem:[%s5191_s8] sm:$0x1] %v5005_v0 }
  0x3c PF: > { %s6442_s1 = sld [smem:[#allocation36_spill]]  ;;  %s4079_s16 = smul.u32 96, %s4987_s27  ;;  %vm342_vm0 = vsmask.f32 3328  ;;  %vm343_vm1 = vsmask.f32 7440 }
  0x3d   : > { %vm5272_vm2 = vmor %vm342_vm0, %vm343_vm1  ;;  %vm948_vm3 = vcmask 1042432   ;;  %vm949_vm4 = vcmask 1046532   ;;  %s3410_s12 = scalar_lea.sflag [#allocation8], %s5171_s14  ;;  %s5006_s19 = smov [#allocation7]  }
  0x3e   : > { %s5229_s13 = scalar_lea.vmem %s5180_s11, %s4079_s16  ;;  %vm5445_vm5 = vmor %vm948_vm3, %vm949_vm4  ;;  %s3466_s16 = sshll.u32 %s5191_s8, 4  ;;  %s3467_s16 = int_to_ptr.vmem [resolvable:$true] %s3466_s16 }
  0x3f   : > { %v302_v13 = vld [vmem:[%s5229_s13] sm:$0xf]  ;;  %v5239_v14 = vld [vmem:[%s5229_s13 + $0x4] sm:$0xf]  ;;  %v5242_v15 = vld [vmem:[%s5229_s13 + $0x8] sm:$0x1] }
  0x40   : > { %v346_v16 = vshrl.u32 %v302_v13, 16  ;;  %v349_v17 = vshll.u32 %v302_v13, 16  ;;  %v355_v18 = vshll.u32 %v5239_v14, 16  ;;  %v359_v19 = vshrl.u32 %v5239_v14, 16  ;;  %v5248_v21 = vld [vmem:[%s5229_s13 + $0xc] sm:$0xf] }
  0x41   : > { %v365_v20 = vshll.u32 %v5242_v15, 16  ;;  %v3673_v24 = vcombine.low %v302_v13, %v5239_v14  ;;  %v5252_v25 = vld [vmem:[%s5229_s13 + $0x10] sm:$0xf]  ;;  %v5255_v26 = vld [vmem:[%s5229_s13 + $0x14] sm:$0x1]  ;;  %v370_v30 = vshrl.u32 %v5248_v21, 16 }
  0x42   : > { %v4705_v1 = vld [vmem:[%s6442_s1 + $0x78] sm:$0xff]   ;;  %v4707_v3 = vld [vmem:[%s6442_s1 + $0x70] sm:$0xff]   ;;  %v4709_v5 = vld [vmem:[%s6442_s1 + $0x68] sm:$0xff]   ;;  %v348_v22 = vrot.slane %v346_v16, 4  ;;  %v351_v23 = vrot.slane %v349_v17, 5  ;;  %v357_v28 = vrot.slane %v355_v18, 5  ;;  %v3674_v55 = vcombine.low %v5248_v21, %v5252_v25 }
  0x43   : > { %v4706_v2 = vld [vmem:[%s6442_s1 + $0x38] sm:$0xff]   ;;  %4287 = vmatprep.subr.bf16.mxu0 %v4705_v1  ;;  %v4708_v4 = vld [vmem:[%s6442_s1 + $0x30] sm:$0xff]   ;;  %v4710_v6 = vld [vmem:[%s6442_s1 + $0x28] sm:$0xff]   ;;  %v361_v29 = vrot.slane %v359_v19, 4  ;;  %4335 = vmatprep.mubr.bf16.mxu1 %v3673_v24  ;;  %v373_v33 = vshll.u32 %v5248_v21, 16  ;;  %v379_v34 = vshll.u32 %v5252_v25, 16 }
  0x44   : > { %4319 = vmatprep.subr.bf16.mxu1 %v4706_v2  ;;  %4288 = vmatpush3.bf16.msra.mxu0 %v4705_v1  ;;  %v4711_v7 = vld [vmem:[%s6442_s1 + $0x60] sm:$0xff]   ;;  %v4713_v9 = vld [vmem:[%s6442_s1 + $0x58] sm:$0xff]   ;;  %v4715_v11 = vld [vmem:[%s6442_s1 + $0x50] sm:$0xff]   ;;  %v352_v32 = vor.u32 %v351_v23, %v348_v22  ;;  %v383_v35 = vshrl.u32 %v5252_v25, 16  ;;  %v367_v39 = vrot.slane %v365_v20, 5  ;;  %v372_v40 = vrot.slane %v370_v30, 4 }
  0x45   : > { %4320 = vmatpush3.bf16.msra.mxu1 %v4706_v2  ;;  %4289 = vmatprep.subr.bf16.mxu0 %v4707_v3  ;;  %v4712_v8 = vld [vmem:[%s6442_s1 + $0x20] sm:$0xff]   ;;  %v4714_v10 = vld [vmem:[%s6442_s1 + $0x18] sm:$0xff]   ;;  %v4716_v12 = vld [vmem:[%s6442_s1 + $0x10] sm:$0xff]   ;;  %v362_v38 = vor.u32 %v361_v29, %v357_v28  ;;  %v389_v41 = vshll.u32 %v5255_v26, 16  ;;  %v375_v43 = vrot.slane %v373_v33, 5  ;;  %v381_v44 = vrot.slane %v379_v34, 5 }
  0x46   : > { %4321 = vmatprep.subr.bf16.mxu1 %v4708_v4  ;;  %v4717_v27 = vld [vmem:[%s6442_s1 + $0x48] sm:$0xff]   ;;  %v4719_v36 = vld [vmem:[%s6442_s1 + $0x40] sm:$0xff]   ;;  %v353_v42 = vrot.slane %v352_v32, 4  ;;  %v385_v45 = vrot.slane %v383_v35, 4  ;;  %v956_v47 = vrot.slane %v5242_v15, 5  ;;  %v963_v54 = vrot.slane %v5255_v26, 5 }
  0x47   : > { %v4718_v31 = vld [vmem:[%s6442_s1 + $0x8] sm:$0xff]   ;;  %v363_v46 = vrot.slane %v362_v38, 4  ;;  %v4720_v48 = vld [vmem:[%s6442_s1] sm:$0xff]   ;;  %v376_v50 = vor.u32 %v375_v43, %v372_v40  ;;  %v391_v52 = vrot.slane %v389_v41, 5  ;;  %v4723_v56 = vld [vmem:[%s6442_s1 + $0xb8] sm:$0xff]   ;;  %s4801_s17 = scalar_lea.vmem %s3467_s16, 16 }
  0x48   : > { %4290 = vmatpush3.bf16.msra.mxu0 %v4707_v3  ;;  %v358_v49 = vsel %vm5272_vm2, %v353_v42, %v357_v28  ;;  %v386_v51 = vor.u32 %v385_v45, %v381_v44  ;;  %v5292_v57 = vld [vmem:[%s5229_s13 + $0x18] sm:$0xf]  ;;  %v5295_v58 = vld [vmem:[%s5229_s13 + $0x1c] sm:$0xf]  ;;  %v5301_v63 = vld [vmem:[%s5229_s13 + $0x20] sm:$0x1]  ;;  %p4802_p6 = scmp.ne.s32.totalorder %s3467_s16, %s4801_s17 }
  0x49   : > { %4322 = vmatpush3.bf16.msra.mxu1 %v4708_v4  ;;  %4291 = vmatprep.subr.bf16.mxu0 %v4709_v5  ;;  %v368_v53 = vsel %vm5272_vm2, %v363_v46, %v367_v39  ;;  %v377_v60 = vrot.slane %v376_v50, 4  ;;  %v4724_v62 = vld [vmem:[%s6442_s1 + $0xf8] sm:$0xff]   ;;  %v394_v0 = vshrl.u32 %v5292_v57, 16  ;;  %v397_v1 = vshll.u32 %v5292_v57, 16  ;;  %v4725_v13 = vld [vmem:[%s6442_s1 + $0xb0] sm:$0xff]   ;;  %v4729_v45 = vld [vmem:[%s6442_s1 + $0xa8] sm:$0xff]  }
  0x4a   : > { %4323 = vmatprep.subr.bf16.mxu1 %v4710_v6  ;;  %v3657_v59 = vcombine.low %v358_v49, %v368_v53  ;;  %v387_v61 = vrot.slane %v386_v51, 4  ;;  %v403_v2 = vshll.u32 %v5295_v58, 16  ;;  %v407_v3 = vshrl.u32 %v5295_v58, 16  ;;  %v4726_v29 = vld [vmem:[%s6442_s1 + $0xf0] sm:$0xff]   ;;  %p4803_p8 = pnand %p4802_p6, %p5151_p12  ;;  %s4805_s20 = sshll.u32 %s5006_s19, 4  ;;  %s4806_s20 = int_to_ptr.vmem [resolvable:$false] %s4805_s20 }
  0x4b   : > { %v413_v4 = vshll.u32 %v5301_v63, 16  ;;  %v399_v16 = vrot.slane %v397_v1, 5  ;;  %v3675_v30 = vcombine.low %v5292_v57, %v5295_v58  ;;  %v5338_v41 = vld [vmem:[%s5229_s13 + $0x30] sm:$0xf]  ;;  %v5348_v46 = vld [vmem:[%s5229_s13 + $0x34] sm:$0xf]  ;;  %p4808_p10 = scmp.lt.s32.totalorder %s3467_s16, %s4806_s20 }
  0x4c   : > { %4292 = vmatpush3.bf16.msra.mxu0 %v4709_v5  ;;  %v5309_v5 = vld [vmem:[%s5229_s13 + $0x24] sm:$0xf]  ;;  %4303 = vmatprep.mubr.bf16.mxu0 %v3657_v59  ;;  %v405_v17 = vrot.slane %v403_v2, 5  ;;  %v409_v18 = vrot.slane %v407_v3, 4  ;;  %v442_v49 = vshrl.u32 %v5338_v41, 16  ;;  %v445_v53 = vshll.u32 %v5338_v41, 16  ;;  %p4804_p9 = pneg %p4803_p8 }
  0x4d   : > { %4324 = vmatpush3.bf16.msra.mxu1 %v4710_v6  ;;  %4293 = vmatprep.subr.bf16.mxu0 %v4711_v7  ;;  %v382_v6 = vsel %vm5272_vm2, %v377_v60, %v381_v44  ;;  %v415_v19 = vrot.slane %v413_v4, 5  ;;  %v418_v20 = vshrl.u32 %v5309_v5, 16  ;;  %v421_v21 = vshll.u32 %v5309_v5, 16  ;;  %v4731_v1 = vld [vmem:[%s6442_s1 + $0xa0] sm:$0xff]   ;;  %s4807_s0 = scalar_lea.vmem %s4806_s20, 32 }
  0x4e   : > { %4325 = vmatprep.subr.bf16.mxu1 %v4712_v8  ;;  %v410_v24 = vor.u32 %v409_v18, %v405_v17  ;;  %v444_v59 = vrot.slane %v442_v49, 4  ;;  %v455_v60 = vshrl.u32 %v5348_v46, 16  ;;  %v447_v2 = vrot.slane %v445_v53, 5  ;;  %p4809_p11 = scmp.lt.s32.totalorder %s4807_s0, %s4801_s17 }
  0x4f   : > { %v423_v32 = vrot.slane %v421_v21, 5  ;;  %v3677_v4 = vcombine.low %v5338_v41, %v5348_v46  ;;  %v981_v26 = vrot.slane %v5348_v46, 5 }
  0x50   : > { %4294 = vmatpush3.bf16.msra.mxu0 %v4711_v7  ;;  %v392_v7 = vsel %vm5272_vm2, %v387_v61, %v391_v52  ;;  %v411_v35 = vrot.slane %v410_v24, 4  ;;  %v4730_v52 = vld [vmem:[%s6442_s1 + $0xe8] sm:$0xff]   ;;  %p4810_p0 = por %p4809_p11, %p4808_p10 }
  0x51   : > { %4326 = vmatpush3.bf16.msra.mxu1 %v4712_v8  ;;  %4295 = vmatprep.subr.bf16.mxu0 %v4713_v9  ;;  %v396_v8 = vrot.slane %v394_v0, 4 }
  0x52   : > { %4327 = vmatprep.subr.bf16.mxu1 %v4714_v10  ;;  %v416_v43 = vsel %vm5272_vm2, %v411_v35, %v415_v19  ;;  %p4811_p1 = pnand %p4810_p0, %p4804_p9 }
  0x53   : > { %v400_v23 = vor.u32 %v399_v16, %v396_v8  ;;  %v457_v8 = vrot.slane %v455_v60, 4 }
  0x54   : > { %4296 = vmatpush3.bf16.msra.mxu0 %v4713_v9  ;;  %v5316_v9 = vld [vmem:[%s5229_s13 + $0x28] sm:$0xf] }
  0x55   : > { %4328 = vmatpush3.bf16.msra.mxu1 %v4714_v10  ;;  %4297 = vmatprep.subr.bf16.mxu0 %v4715_v11  ;;  %v5319_v10 = vld [vmem:[%s5229_s13 + $0x2c] sm:$0x1]  ;;  %v427_v22 = vshll.u32 %v5316_v9, 16  ;;  %v401_v34 = vrot.slane %v400_v23, 4  ;;  %v3676_v40 = vcombine.low %v5309_v5, %v5316_v9  ;;  %v5375_v5 = vld [vmem:[%s5229_s13 + $0x44] sm:$0x1] }
  0x56   : > { %4329 = vmatprep.subr.bf16.mxu1 %v4716_v12  ;;  %v437_v28 = vshll.u32 %v5319_v10, 16  ;;  %v485_v23 = vshll.u32 %v5375_v5, 16 }
  0x57   : > { %v429_v33 = vrot.slane %v427_v22, 5  ;;  %v406_v42 = vsel %vm5272_vm2, %v401_v34, %v405_v17  ;;  %v448_v17 = vor.u32 %v447_v2, %v444_v59 }
  0x58   : > { %4298 = vmatpush3.bf16.msra.mxu0 %v4715_v11  ;;  %v953_v11 = vrot.slane %v5239_v14, 5  ;;  %v439_v38 = vrot.slane %v437_v28, 5  ;;  %v3659_v50 = vcombine.low %v406_v42, %v416_v43  ;;  %v5404_v42 = vld [vmem:[%s5229_s13 + $0x50] sm:$0x1] }
  0x59   : > { %4330 = vmatpush3.bf16.msra.mxu1 %v4716_v12  ;;  %4299 = vmatprep.subr.bf16.mxu0 %v4717_v27  ;;  %v3658_v12 = vcombine.low %v382_v6, %v392_v7  ;;  %v4732_v7 = vld [vmem:[%s6442_s1 + $0xe0] sm:$0xff]   ;;  %v449_v24 = vrot.slane %v448_v17, 4 }
  0x5a   : > { %4331 = vmatprep.subr.bf16.mxu1 %v4718_v31 }
  0x5c   : > { %4300 = vmatpush3.bf16.msra.mxu0 %v4717_v27  ;;  %v431_v27 = vshrl.u32 %v5316_v9, 16 }
  0x5d   : > { %4332 = vmatpush3.bf16.msra.mxu1 %v4718_v31  ;;  %4301 = vmatprep.subr.bf16.mxu0 %v4719_v36  ;;  %v420_v31 = vrot.slane %v418_v20, 4 }
  0x5e   : > { %4333 = vmatprep.subr.bf16.mxu1 %v4720_v48 }
  0x5f   : > { %v424_v39 = vor.u32 %v423_v32, %v420_v31  ;;  %v487_v32 = vrot.slane %v485_v23, 5 }
  0x60   : > { %4302 = vmatpush3.bf16.msra.mxu0 %v4719_v36  ;;  %v433_v36 = vrot.slane %v431_v27, 4 }
  0x61   : > { %4334 = vmatpush3.bf16.msra.mxu1 %v4720_v48  ;;  %4351 = vmatprep.subr.bf16.mxu0 %v4723_v56  ;;  %v5351_v48 = vld [vmem:[%s5229_s13 + $0x38] sm:$0x1]  ;;  %v425_v51 = vrot.slane %v424_v39, 4  ;;  %v5399_v39 = vld [vmem:[%s5229_s13 + $0x4c] sm:$0xf] }
  0x62   : > { %4383 = vmatprep.subr.bf16.mxu1 %v4724_v62  ;;  %v434_v44 = vor.u32 %v433_v36, %v429_v33  ;;  %v461_v61 = vshll.u32 %v5351_v48, 16  ;;  %v503_v53 = vshrl.u32 %v5399_v39, 16 }
  0x63   : > { %4304 = vmatmul.mubr.bf16.vlgmr.msra.gmra.mxu0 %v3658_v12  ;;  %v430_v0 = vsel %vm5272_vm2, %v425_v51, %v429_v33  ;;  %v4736_v33 = vld [vmem:[%s6442_s1 + $0xd8] sm:$0xff]   ;;  %v4737_v51 = vld [vmem:[%s6442_s1 + $0x90] sm:$0xff]  }
  0x64   : > { %4336 = vmatmul.mubr.bf16.vlgmr.msra.gmra.mxu1 %v3674_v55  ;;  %4352 = vmatpush3.bf16.msra.mxu0 %v4723_v56  ;;  %v451_v55 = vshll.u32 %v5348_v46, 16  ;;  %v5360_v56 = vld [vmem:[%s5229_s13 + $0x3c] sm:$0xf]  ;;  %v435_v57 = vrot.slane %v434_v44, 4  ;;  %v463_v12 = vrot.slane %v461_v61, 5  ;;  %v509_v61 = vshll.u32 %v5404_v42, 16 }
  0x65   : > { %4384 = vmatpush3.bf16.msra.mxu1 %v4724_v62  ;;  %4353 = vmatprep.subr.bf16.mxu0 %v4725_v13  ;;  %v5365_v62 = vld [vmem:[%s5229_s13 + $0x40] sm:$0xf]  ;;  %v469_v18 = vshll.u32 %v5360_v56, 16 }
  0x66   : > { %4385 = vmatprep.subr.bf16.mxu1 %v4726_v29  ;;  %4339 = vmatprep.mubr.bf16.mxu1 %v3675_v30  ;;  %v453_v3 = vrot.slane %v451_v55, 5  ;;  %v440_v6 = vsel %vm5272_vm2, %v435_v57, %v439_v38  ;;  %v475_v19 = vshll.u32 %v5365_v62, 16  ;;  %v479_v22 = vshrl.u32 %v5365_v62, 16  ;;  %v314_v38 = vld [vmem:[%s5229_s13 + $0x48] sm:$0xf]  ;;  %v4738_v57 = vld [vmem:[%s6442_s1 + $0xd0] sm:$0xff]  }
  0x67   : > { %4307 = vmatprep.mubr.bf16.mxu0 %v3659_v50  ;;  %v3660_v16 = vcombine.low %v430_v0, %v440_v6  ;;  %v471_v27 = vrot.slane %v469_v18, 5  ;;  %v3678_v36 = vcombine.low %v5360_v56, %v5365_v62  ;;  %v490_v43 = vshrl.u32 %v314_v38, 16  ;;  %v5415_v55 = vld [vmem:[%s5229_s13 + $0x58] sm:$0xf]  ;;  %v5422_v0 = vld [vmem:[%s5229_s13 + $0x5c] sm:$0x1] }
  0x68   : > { %4354 = vmatpush3.bf16.msra.mxu0 %v4725_v13  ;;  %v466_v13 = vshrl.u32 %v5360_v56, 16  ;;  %v458_v20 = vor.u32 %v457_v8, %v453_v3  ;;  %v477_v28 = vrot.slane %v475_v19, 5  ;;  %v481_v31 = vrot.slane %v479_v22, 4  ;;  %v4741_v19 = vld [vmem:[%s6442_s1 + $0x88] sm:$0xff]  }
  0x69   : > { %4386 = vmatpush3.bf16.msra.mxu1 %v4726_v29  ;;  %4355 = vmatprep.subr.bf16.mxu0 %v4729_v45  ;;  %v4735_v29 = vld [vmem:[%s6442_s1 + $0x98] sm:$0xff]   ;;  %v454_v34 = vsel %vm5272_vm2, %v449_v24, %v453_v3  ;;  %v493_v44 = vshll.u32 %v314_v38, 16  ;;  %v492_v59 = vrot.slane %v490_v43, 4  ;;  %v511_v8 = vrot.slane %v509_v61, 5 }
  0x6a   : > { %4387 = vmatprep.subr.bf16.mxu1 %v4730_v52  ;;  %v468_v21 = vrot.slane %v466_v13, 4  ;;  %v459_v30 = vrot.slane %v458_v20, 4  ;;  %v482_v41 = vor.u32 %v481_v31, %v477_v28  ;;  %v523_v18 = vshll.u32 %v5415_v55, 16 }
  0x6b   : > { %4308 = vmatmul.mubr.bf16.gmra.mxu0 %v3660_v16  ;;  %v495_v60 = vrot.slane %v493_v44, 5  ;;  %v527_v22 = vshrl.u32 %v5415_v55, 16  ;;  %v533_v23 = vshll.u32 %v5422_v0, 16  ;;  %v988_v46 = vrot.slane %v5365_v62, 5 }
  0x6c   : > { %4340 = vmatmul.mubr.bf16.gmra.mxu1 %v3676_v40  ;;  %4356 = vmatpush3.bf16.msra.mxu0 %v4729_v45  ;;  %v472_v35 = vor.u32 %v471_v27, %v468_v21  ;;  %v464_v40 = vsel %vm5272_vm2, %v459_v30, %v463_v12  ;;  %v5407_v45 = vld [vmem:[%s5229_s13 + $0x54] sm:$0xf]  ;;  %v483_v56 = vrot.slane %v482_v41, 4  ;;  %v4742_v30 = vld [vmem:[%s6442_s1 + $0xc8] sm:$0xff]   ;;  %v4743_v41 = vld [vmem:[%s6442_s1 + $0x80] sm:$0xff]  }
  0x6d   : > { %4388 = vmatpush3.bf16.msra.mxu1 %v4730_v52  ;;  %4357 = vmatprep.subr.bf16.mxu0 %v4731_v1  ;;  %v3661_v49 = vcombine.low %v454_v34, %v464_v40  ;;  %v499_v52 = vshll.u32 %v5399_v39, 16  ;;  %v514_v12 = vshrl.u32 %v5407_v45, 16  ;;  %v517_v17 = vshll.u32 %v5407_v45, 16 }
  0x6e   : > { %4389 = vmatprep.subr.bf16.mxu1 %v4732_v7  ;;  %4343 = vmatprep.mubr.bf16.mxu1 %v3677_v4  ;;  %v473_v50 = vrot.slane %v472_v35, 4  ;;  %v505_v4 = vrot.slane %v503_v53, 4  ;;  %v488_v6 = vsel %vm5272_vm2, %v483_v56, %v487_v32  ;;  %v529_v31 = vrot.slane %v527_v22, 4  ;;  %v924_v32 = vld [vmem:[%s5229_s13] sm:$0xe]  ;;  %v4745_v53 = vld [vmem:[%s5229_s13 + $0xc] sm:$0xff]  }
  0x6f   : > { %4311 = vmatprep.mubr.bf16.mxu0 %v3661_v49  ;;  %v501_v3 = vrot.slane %v499_v52, 5  ;;  %v516_v21 = vrot.slane %v514_v12, 4  ;;  %v519_v27 = vrot.slane %v517_v17, 5  ;;  %v955_v34 = vrot.slane %v953_v11, 4  ;;  %v925_v56 = vld [vmem:[%s5229_s13 + $0xc] sm:$0xe] }
  0x70   : > { %4358 = vmatpush3.bf16.msra.mxu0 %v4731_v1  ;;  %v478_v2 = vsel %vm5272_vm2, %v473_v50, %v477_v28  ;;  %v3679_v1 = vcombine.low %v314_v38, %v5399_v39  ;;  %v525_v28 = vrot.slane %v523_v18, 5  ;;  %v960_v35 = vrot.slane %v5252_v25, 5  ;;  %v4744_v25 = vld [vmem:[%s6442_s1 + $0xc0] sm:$0xff]  }
  0x71   : > { %4390 = vmatpush3.bf16.msra.mxu1 %v4732_v7  ;;  %4359 = vmatprep.subr.bf16.mxu0 %v4735_v29  ;;  %v496_v7 = vor.u32 %v495_v60, %v492_v59  ;;  %v3662_v13 = vcombine.low %v478_v2, %v488_v6  ;;  %v506_v16 = vor.u32 %v505_v4, %v501_v3  ;;  %v3689_v43 = vrot.slane %v924_v32, 9  ;;  %v4748_v4 = vld [vmem:[%s6442_s1 + $0x178] sm:$0xff]   ;;  %v4756_v32 = vld [vmem:[%s6442_s1 + $0x160] sm:$0xff]  }
  0x72   : > { %4391 = vmatprep.subr.bf16.mxu1 %v4736_v33  ;;  %v520_v38 = vor.u32 %v519_v27, %v516_v21  ;;  %v3680_v40 = vcombine.low %v5407_v45, %v5415_v55  ;;  %v530_v49 = vor.u32 %v529_v31, %v525_v28  ;;  %v535_v50 = vrot.slane %v533_v23, 5  ;;  %v928_v23 = vld [vmem:[%s5229_s13 + $0x30] sm:$0xe]  ;;  %v4753_v31 = vld [vmem:[%s6442_s1 + $0x128] sm:$0xff]  }
  0x73   : > { %v497_v20 = vrot.slane %v496_v7, 4  ;;  %4312 = vmatmul.mubr.bf16.gmra.mxu0 %v3662_v13  ;;  %v507_v24 = vrot.slane %v506_v16, 4  ;;  %v962_v59 = vrot.slane %v960_v35, 4  ;;  %v3690_v14 = vrot.slane %v925_v56, 9  ;;  %v4746_v7 = vld [vmem:[%s5229_s13 + $0x18] sm:$0xff]   ;;  %v4751_v16 = vld [vmem:[%s5229_s13 + $0x24] sm:$0xff]  }
  0x74   : > { %4344 = vmatmul.mubr.bf16.gmra.mxu1 %v3678_v36  ;;  %4360 = vmatpush3.bf16.msra.mxu0 %v4735_v29  ;;  %v521_v52 = vrot.slane %v520_v38, 4  ;;  %v531_v45 = vrot.slane %v530_v49, 4  ;;  %v967_v2 = vrot.slane %v5295_v58, 5  ;;  %v970_v58 = vrot.slane %v5301_v63, 5  ;;  %v927_v63 = vld [vmem:[%s5229_s13 + $0x24] sm:$0xe] }
  0x75   : > { %4392 = vmatpush3.bf16.msra.mxu1 %v4736_v33  ;;  %4361 = vmatprep.subr.bf16.mxu0 %v4737_v51  ;;  %v502_v29 = vsel %vm5272_vm2, %v497_v20, %v501_v3  ;;  %v512_v36 = vsel %vm5272_vm2, %v507_v24, %v511_v8  ;;  %v926_v3 = vld [vmem:[%s5229_s13 + $0x18] sm:$0xe]  ;;  %v4750_v8 = vld [vmem:[%s6442_s1 + $0x170] sm:$0xff]   ;;  %v961_v12 = vsel %vm5445_vm5, %v3690_v14, %v960_v35  ;;  %v974_v17 = vrot.slane %v5316_v9, 5 }
  0x76   : > { %4393 = vmatprep.subr.bf16.mxu1 %v4738_v57  ;;  %4347 = vmatprep.mubr.bf16.mxu1 %v3679_v1  ;;  %v3663_v44 = vcombine.low %v502_v29, %v512_v36  ;;  %v526_v60 = vsel %vm5272_vm2, %v521_v52, %v525_v28  ;;  %v536_v61 = vsel %vm5272_vm2, %v531_v45, %v535_v50  ;;  %v3691_v1 = vrot.slane %v926_v3, 9  ;;  %v4752_v27 = vld [vmem:[%s5229_s13 + $0x30] sm:$0xff]   ;;  %v4754_v28 = vld [vmem:[%s6442_s1 + $0x168] sm:$0xff]  }
  0x77   : > { %v969_v6 = vrot.slane %v967_v2, 4  ;;  %v964_v13 = vsel %vm5445_vm5, %v962_v59, %v963_v54  ;;  %v4749_v54 = vld [vmem:[%s6442_s1 + $0x130] sm:$0xff]   ;;  %v977_v9 = vrot.slane %v5319_v10, 5  ;;  %v3692_v21 = vrot.slane %v927_v63, 9 }
  0x78   : > { %4362 = vmatpush3.bf16.msra.mxu0 %v4737_v51  ;;  %4315 = vmatprep.mubr.bf16.mxu0 %v3663_v44  ;;  %v954_v51 = vsel %vm5445_vm5, %v3689_v43, %v953_v11  ;;  %v3664_v11 = vcombine.low %v526_v60, %v536_v61  ;;  %v968_v18 = vsel %vm5445_vm5, %v3691_v1, %v967_v2  ;;  %v976_v22 = vrot.slane %v974_v17, 4  ;;  %v931_v45 = vld [vmem:[%s5229_s13 + $0x54] sm:$0xe]  ;;  %v4758_v61 = vld [vmem:[%s5229_s13 + $0x48] sm:$0xff]  }
  0x79   : > { %4394 = vmatpush3.bf16.msra.mxu1 %v4738_v57  ;;  %4363 = vmatprep.subr.bf16.mxu0 %v4741_v19  ;;  %v957_v57 = vsel %vm5445_vm5, %v955_v34, %v956_v47  ;;  %v4747_v47 = vld [vmem:[%s6442_s1 + $0x138] sm:$0xff]   ;;  %v3714_v20 = vcombine.low %v961_v12, %v964_v13  ;;  %v983_v29 = vrot.slane %v981_v26, 4  ;;  %v984_v10 = vrot.slane %v5351_v48, 5  ;;  %v3781_v12 = vld [vmem:[%s5229_s13 + $0x14] sm:$0x1] }
  0x7a   : > { %4395 = vmatprep.subr.bf16.mxu1 %v4742_v30  ;;  %v3713_v15 = vcombine.low %v954_v51, %v957_v57  ;;  %v929_v34 = vld [vmem:[%s5229_s13 + $0x3c] sm:$0xe]  ;;  %v975_v62 = vsel %vm5445_vm5, %v3692_v21, %v974_v17  ;;  %v978_v35 = vsel %vm5445_vm5, %v976_v22, %v977_v9  ;;  %v995_v36 = vrot.slane %v5399_v39, 5  ;;  %v4763_v3 = vld [vmem:[%s5229_s13 + $0x54] sm:$0xff]  }
  0x7b   : > { %4316 = vmatmul.mubr.bf16.gmra.mxu0 %v3664_v11  ;;  %v4757_v48 = vld [vmem:[%s5229_s13 + $0x3c] sm:$0xff]   ;;  %v990_v38 = vrot.slane %v988_v46, 4  ;;  %v985_v43 = vsel %vm5445_vm5, %v983_v29, %v984_v10  ;;  %v3694_v44 = vrot.slane %v929_v34, 9  ;;  %v998_v49 = vrot.slane %v5404_v42, 5  ;;  %v3782_v13 = vld [vmem:[%s5229_s13 + $0x18] sm:$0xf] }
  0x7c   : > { %4348 = vmatmul.mubr.bf16.gmra.mxu1 %v3680_v40  ;;  %4364 = vmatpush3.bf16.msra.mxu0 %v4741_v19  ;;  %v971_v19 = vsel %vm5445_vm5, %v969_v6, %v970_v58  ;;  %v991_v40 = vrot.slane %v5375_v5, 5  ;;  %v3716_v50 = vcombine.low %v975_v62, %v978_v35  ;;  %v997_v39 = vrot.slane %v995_v36, 4  ;;  %v4755_v5 = vld [vmem:[%s6442_s1 + $0x120] sm:$0xff]   ;;  %v4761_v6 = vld [vmem:[%s6442_s1 + $0x110] sm:$0xff]   ;;  %v3783_v17 = vld [vmem:[%s5229_s13 + $0x1c] sm:$0xf] }
  0x7d   : > { %4396 = vmatpush3.bf16.msra.mxu1 %v4742_v30  ;;  %4365 = vmatprep.subr.bf16.mxu0 %v4743_v41  ;;  %v3715_v24 = vcombine.low %v968_v18, %v971_v19  ;;  %v3693_v30 = vrot.slane %v928_v23, 9  ;;  %v1002_v52 = vrot.slane %v5415_v55, 5  ;;  %v1005_v42 = vrot.slane %v5422_v0, 5  ;;  %v4760_v55 = vld [vmem:[%s6442_s1 + $0x158] sm:$0xff]   ;;  %v3835_v23 = vld [vmem:[%s5229_s13 + $0xc] sm:$0xe] }
  0x7e   : > { %4397 = vmatprep.subr.bf16.mxu1 %v4744_v25  ;;  %4399 = vmatprep.mubr.bf16.mxu1 %v4745_v53  ;;  %v3696_v57 = vrot.slane %v931_v45, 9  ;;  %v989_v59 = vsel %vm5445_vm5, %v3694_v44, %v988_v46  ;;  %v992_v60 = vsel %vm5445_vm5, %v990_v38, %v991_v40  ;;  %v999_v14 = vsel %vm5445_vm5, %v997_v39, %v998_v49  ;;  %v4759_v0 = vld [vmem:[%s6442_s1 + $0x118] sm:$0xff]   ;;  %v4765_v29 = vld [vmem:[%s6442_s1 + $0x108] sm:$0xff]   ;;  %v3837_v62 = vld [vmem:[%s5229_s13 + $0x14] sm:$0x1] }
  0x7f   : > { %4367 = vmatprep.mubr.bf16.mxu0 %v3713_v15  ;;  %v1004_v51 = vrot.slane %v1002_v52, 4  ;;  %v3718_v1 = vcombine.low %v989_v59, %v992_v60  ;;  %v1512_v9 = vshrl.u32 %v3782_v13, 16  ;;  %v1515_v21 = vshll.u32 %v3782_v13, 16  ;;  %v3784_v40 = vld [vmem:[%s5229_s13 + $0x20] sm:$0x1] }
  0x80   : > { %4366 = vmatpush3.bf16.msra.mxu0 %v4743_v41  ;;  %v982_v41 = vsel %vm5445_vm5, %v3693_v30, %v981_v26  ;;  %v5557_v11 = vsel %vm5445_vm5, %v3696_v57, %v1002_v52  ;;  %v1521_v22 = vshll.u32 %v3783_v17, 16  ;;  %v3836_v30 = vld [vmem:[%s5229_s13 + $0x10] sm:$0xf]  ;;  %v3859_v38 = vrot.slane %v3835_v23, 9  ;;  %v3839_v39 = vld [vmem:[%s5229_s13 + $0x1c] sm:$0xf] }
  0x81   : > { %4398 = vmatpush3.bf16.msra.mxu1 %v4744_v25  ;;  %4415 = vmatprep.subr.bf16.mxu0 %v4747_v47  ;;  %v930_v25 = vld [vmem:[%s5229_s13 + $0x48] sm:$0xe]  ;;  %v3717_v56 = vcombine.low %v982_v41, %v985_v43  ;;  %v5561_v15 = vsel %vm5445_vm5, %v1004_v51, %v1005_v42  ;;  %v3838_v41 = vld [vmem:[%s5229_s13 + $0x18] sm:$0xe]  ;;  %v4768_v43 = vld [vmem:[%s6442_s1 + $0x140] sm:$0xff]   ;;  %v1995_v49 = vrot.slane %v3836_v30, 5 }
  0x82   : > { %4447 = vmatprep.subr.bf16.mxu1 %v4748_v4  ;;  %v3695_v53 = vrot.slane %v930_v25, 9  ;;  %v1523_v34 = vrot.slane %v1521_v22, 5  ;;  %v1531_v25 = vshll.u32 %v3784_v40, 16  ;;  %v3860_v45 = vrot.slane %v3838_v41, 9  ;;  %v4767_v59 = vld [vmem:[%s6442_s1 + $0x100] sm:$0xff]   ;;  %v4769_v22 = vld [vmem:[%s6442_s1 + $0x1b8] sm:$0xff]  }
  0x83   : > { %4368 = vmatmul.mubr.bf16.vlgmr.msra.gmra.mxu0 %v3714_v20  ;;  %v4764_v20 = vld [vmem:[%s5229_s13 + $0x60] sm:$0xff]   ;;  %v1996_v42 = vsel %vm5445_vm5, %v3859_v38, %v1995_v49  ;;  %v3789_v41 = vld [vmem:[%s5229_s13 + $0x34] sm:$0xf] }
  0x84   : > { %4400 = vmatmul.mubr.bf16.vlgmr.msra.gmra.mxu1 %v4746_v7  ;;  %4416 = vmatpush3.bf16.msra.mxu0 %v4747_v47  ;;  %v996_v2 = vsel %vm5445_vm5, %v3695_v53, %v995_v36  ;;  %v4762_v47 = vld [vmem:[%s6442_s1 + $0x150] sm:$0xff]   ;;  %v3720_v7 = vcombine.low %v5557_v11, %v5561_v15  ;;  %v1525_v36 = vshrl.u32 %v3783_v17, 16  ;;  %v1533_v57 = vrot.slane %v1531_v25, 5  ;;  %v3790_v25 = vld [vmem:[%s5229_s13 + $0x38] sm:$0x1] }
  0x85   : > { %4448 = vmatpush3.bf16.msra.mxu1 %v4748_v4  ;;  %4403 = vmatprep.mubr.bf16.mxu1 %v4751_v16  ;;  %v3779_v4 = vld [vmem:[%s5229_s13 + $0xc] sm:$0xf]  ;;  %v3719_v58 = vcombine.low %v996_v2, %v999_v14 }
  0x86   : > { %4449 = vmatprep.subr.bf16.mxu1 %v4750_v8  ;;  %4417 = vmatprep.subr.bf16.mxu0 %v4749_v54  ;;  %v4766_v16 = vld [vmem:[%s6442_s1 + $0x148] sm:$0xff]   ;;  %v1488_v63 = vshrl.u32 %v3779_v4, 16  ;;  %v1491_v18 = vshll.u32 %v3779_v4, 16  ;;  %v1527_v53 = vrot.slane %v1525_v36, 4 }
  0x87   : > { %4371 = vmatprep.mubr.bf16.mxu0 %v3715_v24 }
  0x88   : > { %4418 = vmatpush3.bf16.msra.mxu0 %v4749_v54  ;;  %v1507_v54 = vshll.u32 %v3781_v12, 16  ;;  %v1490_v24 = vrot.slane %v1488_v63, 4  ;;  %v1528_v14 = vor.u32 %v1527_v53, %v1523_v34  ;;  %v4770_v12 = vld [vmem:[%s6442_s1 + $0x1f8] sm:$0xff]  }
  0x89   : > { %4450 = vmatpush3.bf16.msra.mxu1 %v4750_v8  ;;  %4419 = vmatprep.subr.bf16.mxu0 %v4753_v31  ;;  %v3780_v8 = vld [vmem:[%s5229_s13 + $0x10] sm:$0xf] }
  0x8a   : > { %4451 = vmatprep.subr.bf16.mxu1 %v4754_v28  ;;  %v1497_v19 = vshll.u32 %v3780_v8, 16  ;;  %v1501_v26 = vshrl.u32 %v3780_v8, 16  ;;  %v1509_v10 = vrot.slane %v1507_v54, 5 }
  0x8b   : > { %4372 = vmatmul.mubr.bf16.gmra.mxu0 %v3716_v50  ;;  %v1998_v50 = vrot.slane %v3837_v62, 5 }
  0x8c   : > { %4404 = vmatmul.mubr.bf16.gmra.mxu1 %v4752_v27  ;;  %4420 = vmatpush3.bf16.msra.mxu0 %v4753_v31  ;;  %v1493_v27 = vrot.slane %v1491_v18, 5  ;;  %v1499_v46 = vrot.slane %v1497_v19, 5  ;;  %v1514_v31 = vrot.slane %v1512_v9, 4  ;;  %v3785_v18 = vld [vmem:[%s5229_s13 + $0x24] sm:$0xf] }
  0x8d   : > { %4452 = vmatpush3.bf16.msra.mxu1 %v4754_v28  ;;  %4407 = vmatprep.mubr.bf16.mxu1 %v4757_v48  ;;  %v1503_v28 = vrot.slane %v1501_v26, 4  ;;  %v3786_v19 = vld [vmem:[%s5229_s13 + $0x28] sm:$0xf]  ;;  %v1536_v54 = vshrl.u32 %v3785_v18, 16  ;;  %v1539_v9 = vshll.u32 %v3785_v18, 16 }
  0x8e   : > { %4453 = vmatprep.subr.bf16.mxu1 %v4756_v32  ;;  %4421 = vmatprep.subr.bf16.mxu0 %v4755_v5  ;;  %v1494_v35 = vor.u32 %v1493_v27, %v1490_v24  ;;  %v1549_v23 = vshrl.u32 %v3786_v19, 16  ;;  %v3841_v24 = vld [vmem:[%s5229_s13 + $0x24] sm:$0xe]  ;;  %v3842_v27 = vld [vmem:[%s5229_s13 + $0x28] sm:$0xf] }
  0x8f   : > { %4375 = vmatprep.mubr.bf16.mxu0 %v3717_v56  ;;  %v1504_v48 = vor.u32 %v1503_v28, %v1499_v46  ;;  %v3840_v56 = vld [vmem:[%s5229_s13 + $0x20] sm:$0x1]  ;;  %v4772_v28 = vld [vmem:[%s6442_s1 + $0x1f0] sm:$0xff]   ;;  %v1538_v30 = vrot.slane %v1536_v54, 4  ;;  %v2009_v38 = vrot.slane %v3842_v27, 5 }
  0x90   : > { %4422 = vmatpush3.bf16.msra.mxu0 %v4755_v5  ;;  %v1495_v52 = vrot.slane %v1494_v35, 4  ;;  %v2005_v63 = vrot.slane %v3840_v56, 5  ;;  %v3861_v35 = vrot.slane %v3841_v24, 9 }
  0x91   : > { %4454 = vmatpush3.bf16.msra.mxu1 %v4756_v32  ;;  %4423 = vmatprep.subr.bf16.mxu0 %v4759_v0  ;;  %v1517_v32 = vrot.slane %v1515_v21, 5  ;;  %v1505_v5 = vrot.slane %v1504_v48, 4  ;;  %v1545_v21 = vshll.u32 %v3786_v19, 16  ;;  %v3788_v48 = vld [vmem:[%s5229_s13 + $0x30] sm:$0xf]  ;;  %v2011_v53 = vrot.slane %v2009_v38, 4 }
  0x92   : > { %4455 = vmatprep.subr.bf16.mxu1 %v4760_v55  ;;  %v1500_v60 = vsel %vm5272_vm2, %v1495_v52, %v1499_v46  ;;  %v1563_v56 = vshll.u32 %v3788_v48, 16 }
  0x93   : > { %4376 = vmatmul.mubr.bf16.gmra.mxu0 %v3718_v1  ;;  %v1518_v44 = vor.u32 %v1517_v32, %v1514_v31  ;;  %v3843_v31 = vld [vmem:[%s5229_s13 + $0x2c] sm:$0x1]  ;;  %v1551_v32 = vrot.slane %v1549_v23, 4  ;;  %v4775_v23 = vld [vmem:[%s6442_s1 + $0x1a0] sm:$0xff]  }
  0x94   : > { %4408 = vmatmul.mubr.bf16.gmra.mxu1 %v4758_v61  ;;  %4424 = vmatpush3.bf16.msra.mxu0 %v4759_v0  ;;  %v1510_v61 = vsel %vm5272_vm2, %v1505_v5, %v1509_v10  ;;  %v2002_v0 = vrot.slane %v3839_v39, 5  ;;  %v1547_v10 = vrot.slane %v1545_v21, 5  ;;  %v2012_v40 = vrot.slane %v3843_v31, 5  ;;  %v3791_v21 = vld [vmem:[%s5229_s13 + $0x3c] sm:$0xf] }
  0x95   : > { %4456 = vmatpush3.bf16.msra.mxu1 %v4760_v55  ;;  %4411 = vmatprep.mubr.bf16.mxu1 %v4763_v3  ;;  %v1519_v51 = vrot.slane %v1518_v44, 4  ;;  %v1997_v55 = vrot.slane %v1995_v49, 4  ;;  %v1697_v3 = vunpack.c.l.bf16 %v1510_v61  ;;  %v3819_v4 = vcombine.low %v1500_v60, %v1510_v61  ;;  %v3846_v61 = vld [vmem:[%s5229_s13 + $0x38] sm:$0x1] }
  0x96   : > { %4457 = vmatprep.subr.bf16.mxu1 %v4762_v47  ;;  %4425 = vmatprep.subr.bf16.mxu0 %v4761_v6  ;;  %v2003_v8 = vsel %vm5445_vm5, %v3860_v45, %v2002_v0  ;;  %v2004_v17 = vrot.slane %v2002_v0, 4  ;;  %v1552_v44 = vor.u32 %v1551_v32, %v1547_v10  ;;  %v1560_v39 = vshrl.u32 %v3788_v48, 16  ;;  %v3844_v45 = vld [vmem:[%s5229_s13 + $0x30] sm:$0xe]  ;;  %v3848_v48 = vld [vmem:[%s5229_s13 + $0x40] sm:$0xf] }
  0x97   : > { %4379 = vmatprep.mubr.bf16.mxu0 %v3719_v58  ;;  %v5605_v2 = vsel %vm5272_vm2, %v1519_v51, %v1523_v34  ;;  %v1529_v58 = vrot.slane %v1528_v14, 4  ;;  %v2010_v5 = vsel %vm5445_vm5, %v3861_v35, %v2009_v38  ;;  %v3845_v51 = vld [vmem:[%s5229_s13 + $0x34] sm:$0xf]  ;;  %v2013_v0 = vsel %vm5445_vm5, %v2011_v53, %v2012_v40  ;;  %v3847_v35 = vld [vmem:[%s5229_s13 + $0x3c] sm:$0xe] }
  0x98   : > { %4426 = vmatpush3.bf16.msra.mxu0 %v4761_v6  ;;  %v1698_v1 = vunpack.c.l.bf16 %v5605_v2  ;;  %v1999_v6 = vsel %vm5445_vm5, %v1997_v55, %v1998_v50  ;;  %v1553_v55 = vrot.slane %v1552_v44, 4  ;;  %v3862_v19 = vrot.slane %v3844_v45, 9  ;;  %v3794_v44 = vld [vmem:[%s5229_s13 + $0x48] sm:$0xf] }
  0x99   : > { %4458 = vmatpush3.bf16.msra.mxu1 %v4762_v47  ;;  %4427 = vmatprep.subr.bf16.mxu0 %v4765_v29  ;;  %v1696_v47 = vunpack.c.l.bf16 %v1500_v60  ;;  %v1534_v26 = vsel %vm5272_vm2, %v1529_v58, %v1533_v57  ;;  %v1562_v57 = vrot.slane %v1560_v39, 4  ;;  %v1573_v60 = vshrl.u32 %v3789_v41, 16  ;;  %v4773_v58 = vld [vmem:[%s6442_s1 + $0x1a8] sm:$0xff]  }
  0x9a   : > { %4459 = vmatprep.subr.bf16.mxu1 %v4766_v16  ;;  %v3820_v15 = vcombine.low %v5605_v2, %v1534_v26  ;;  %v1699_v62 = vunpack.c.l.bf16 %v1534_v26  ;;  %v1565_v2 = vrot.slane %v1563_v56, 5  ;;  %v2016_v26 = vrot.slane %v3845_v51, 5 }
  0x9b   : > { %4380 = vmatmul.mubr.bf16.gmra.mxu0 %v3720_v7  ;;  %v1712_v13 = vadd.f32 %v1697_v3, %v1696_v47  ;;  %v2006_v7 = vsel %vm5445_vm5, %v2004_v17, %v2005_v63  ;;  %v1579_v47 = vshll.u32 %v3790_v25, 16  ;;  %v4776_v17 = vld [vmem:[%s6442_s1 + $0x1e0] sm:$0xff]   ;;  %v1584_v24 = vshrl.u32 %v3791_v21, 16 }
  0x9c   : > { %4412 = vmatmul.mubr.bf16.gmra.mxu1 %v4764_v20  ;;  %4428 = vmatpush3.bf16.msra.mxu0 %v4765_v29  ;;  %v3787_v20 = vld [vmem:[%s5229_s13 + $0x2c] sm:$0x1]  ;;  %v3884_v46 = vcombine.low %v2003_v8, %v2006_v7  ;;  %v1541_v29 = vrot.slane %v1539_v9, 5  ;;  %v2019_v9 = vrot.slane %v3846_v61, 5  ;;  %v2017_v7 = vsel %vm5445_vm5, %v3862_v19, %v2016_v26 }
  0x9d   : > { %4460 = vmatpush3.bf16.msra.mxu1 %v4766_v16  ;;  %v3883_v16 = vcombine.low %v1996_v42, %v1999_v6  ;;  %4429 = vmatprep.subr.bf16.mxu0 %v4767_v59  ;;  %v1713_v11 = vadd.f32 %v1712_v13, %v1698_v1  ;;  %v1555_v34 = vshll.u32 %v3787_v20, 16  ;;  %v4774_v42 = vld [vmem:[%s6442_s1 + $0x1e8] sm:$0xff]   ;;  %v3885_v1 = vcombine.low %v2010_v5, %v2013_v0  ;;  %v4777_v5 = vld [vmem:[%s6442_s1 + $0x198] sm:$0xff]  }
  0x9e   : > { %4461 = vmatprep.subr.bf16.mxu1 %v4768_v43  ;;  %4431 = vmatprep.mubr.bf16.mxu0 %v3819_v4  ;;  %v1542_v36 = vor.u32 %v1541_v29, %v1538_v30  ;;  %v1566_v13 = vor.u32 %v1565_v2, %v1562_v57  ;;  %v1581_v18 = vrot.slane %v1579_v47, 5  ;;  %v1587_v30 = vshll.u32 %v3791_v21, 16 }
  0x9f   : > { %4463 = vmatprep.mubr.bf16.mxu1 %v3883_v16  ;;  %v1557_v49 = vrot.slane %v1555_v34, 5  ;;  %v1714_v50 = vadd.f32 %v1713_v11, %v1699_v62  ;;  %v1575_v16 = vrot.slane %v1573_v60, 4  ;;  %v3792_v11 = vld [vmem:[%s5229_s13 + $0x40] sm:$0xf]  ;;  %v1586_v34 = vrot.slane %v1584_v24, 4 }
  0xa0   : > { %4430 = vmatpush3.bf16.msra.mxu0 %v4767_v59  ;;  %v1543_v52 = vrot.slane %v1542_v36, 4  ;;  %v1569_v59 = vshll.u32 %v3789_v41, 16  ;;  %v1567_v20 = vrot.slane %v1566_v13, 4  ;;  %v1593_v29 = vshll.u32 %v3792_v11, 16  ;;  %v3852_v13 = vld [vmem:[%s5229_s13 + $0x50] sm:$0x1] }
  0xa1   : > { %4462 = vmatpush3.bf16.msra.mxu1 %v4768_v43  ;;  %4479 = vmatprep.subr.bf16.mxu0 %v4769_v22  ;;  %v4771_v43 = vld [vmem:[%s6442_s1 + $0x1b0] sm:$0xff]   ;;  %v1558_v3 = vsel %vm5272_vm2, %v1553_v55, %v1557_v49  ;;  %v1597_v62 = vshrl.u32 %v3792_v11, 16  ;;  %v1589_v40 = vrot.slane %v1587_v30, 5  ;;  %v3863_v45 = vrot.slane %v3847_v35, 9  ;;  %v4781_v30 = vld [vmem:[%s6442_s1 + $0x188] sm:$0xff]  }
  0xa2   : > { %4511 = vmatprep.subr.bf16.mxu1 %v4770_v12  ;;  %v1548_v14 = vsel %vm5272_vm2, %v1543_v52, %v1547_v10  ;;  %v1571_v6 = vrot.slane %v1569_v59, 5  ;;  %v1701_v8 = vunpack.c.l.bf16 %v1558_v3  ;;  %v4778_v10 = vld [vmem:[%s6442_s1 + $0x1d8] sm:$0xff]   ;;  %v1595_v41 = vrot.slane %v1593_v29, 5  ;;  %v3795_v52 = vld [vmem:[%s5229_s13 + $0x4c] sm:$0xf]  ;;  %v4780_v55 = vld [vmem:[%s6442_s1 + $0x1d0] sm:$0xff]  }
  0xa3   : > { %4432 = vmatmul.mubr.bf16.vlgmr.msra.gmra.mxu0 %v3820_v15  ;;  %v1700_v4 = vunpack.c.l.bf16 %v1548_v14  ;;  %v1599_v39 = vrot.slane %v1597_v62, 4  ;;  %v1590_v53 = vor.u32 %v1589_v40, %v1586_v34  ;;  %v2023_v51 = vrot.slane %v3848_v48, 5  ;;  %v3799_v35 = vld [vmem:[%s5229_s13 + $0x5c] sm:$0x1] }
  0xa4   : > { %4464 = vmatmul.mubr.bf16.vlgmr.msra.gmra.mxu1 %v3884_v46  ;;  %4480 = vmatpush3.bf16.msra.mxu0 %v4769_v22  ;;  %v1576_v54 = vor.u32 %v1575_v16, %v1571_v6  ;;  %v2018_v22 = vrot.slane %v2016_v26, 4  ;;  %v1572_v27 = vsel %vm5272_vm2, %v1567_v20, %v1571_v6  ;;  %v1608_v61 = vshrl.u32 %v3794_v44, 16 }
  0xa5   : > { %4512 = vmatpush3.bf16.msra.mxu1 %v4770_v12  ;;  %4481 = vmatprep.subr.bf16.mxu0 %v4771_v43  ;;  %v3821_v12 = vcombine.low %v1548_v14, %v1558_v3  ;;  %v1715_v63 = vadd.f32 %v1714_v50, %v1700_v4  ;;  %v1702_v31 = vunpack.c.l.bf16 %v1572_v27  ;;  %v1600_v59 = vor.u32 %v1599_v39, %v1595_v41  ;;  %v3850_v3 = vld [vmem:[%s5229_s13 + $0x48] sm:$0xe]  ;;  %v4779_v4 = vld [vmem:[%s6442_s1 + $0x190] sm:$0xff]  }
  0xa6   : > { %4513 = vmatprep.subr.bf16.mxu1 %v4772_v28  ;;  %4467 = vmatprep.mubr.bf16.mxu1 %v3885_v1  ;;  %v1577_v46 = vrot.slane %v1576_v54, 4  ;;  %v2020_v32 = vsel %vm5445_vm5, %v2018_v22, %v2019_v9  ;;  %v1591_v14 = vrot.slane %v1590_v53, 4  ;;  %v2024_v2 = vsel %vm5445_vm5, %v3863_v45, %v2023_v51  ;;  %v4782_v9 = vld [vmem:[%s6442_s1 + $0x1c8] sm:$0xff]   ;;  %v3797_v22 = vld [vmem:[%s5229_s13 + $0x54] sm:$0xf] }
  0xa7   : > { %4435 = vmatprep.mubr.bf16.mxu0 %v3821_v12  ;;  %v1716_v15 = vadd.f32 %v1715_v63, %v1701_v8  ;;  %v3886_v38 = vcombine.low %v2017_v7, %v2020_v32  ;;  %v2025_v47 = vrot.slane %v2023_v51, 4  ;;  %v1601_v1 = vrot.slane %v1600_v59, 4  ;;  %v3851_v12 = vld [vmem:[%s5229_s13 + $0x4c] sm:$0xf] }
  0xa8   : > { %4482 = vmatpush3.bf16.msra.mxu0 %v4771_v43  ;;  %v1582_v36 = vsel %vm5272_vm2, %v1577_v46, %v1581_v18  ;;  %v3849_v43 = vld [vmem:[%s5229_s13 + $0x44] sm:$0x1]  ;;  %v1610_v6 = vrot.slane %v1608_v61, 4  ;;  %v1617_v8 = vshll.u32 %v3795_v52, 16  ;;  %v1596_v16 = vsel %vm5272_vm2, %v1591_v14, %v1595_v41 }
  0xa9   : > { %4514 = vmatpush3.bf16.msra.mxu1 %v4772_v28  ;;  %4483 = vmatprep.subr.bf16.mxu0 %v4773_v58  ;;  %v3793_v28 = vld [vmem:[%s5229_s13 + $0x44] sm:$0x1]  ;;  %v1703_v49 = vunpack.c.l.bf16 %v1582_v36  ;;  %v1717_v50 = vadd.f32 %v1716_v15, %v1702_v31  ;;  %v3822_v25 = vcombine.low %v1572_v27, %v1582_v36  ;;  %v2026_v60 = vrot.slane %v3849_v43, 5 }
  0xaa   : > { %4515 = vmatprep.subr.bf16.mxu1 %v4774_v42  ;;  %v1603_v56 = vshll.u32 %v3793_v28, 16  ;;  %v1621_v63 = vshrl.u32 %v3795_v52, 16  ;;  %v1704_v26 = vunpack.c.l.bf16 %v1596_v16  ;;  %v1619_v15 = vrot.slane %v1617_v8, 5 }
  0xab   : > { %v1718_v57 = vadd.f32 %v1717_v50, %v1703_v49  ;;  %4436 = vmatmul.mubr.bf16.gmra.mxu0 %v3822_v25  ;;  %v3864_v28 = vrot.slane %v3850_v3, 9  ;;  %v2033_v31 = vrot.slane %v3852_v13, 5  ;;  %v1632_v32 = vshrl.u32 %v3797_v22, 16  ;;  %v3853_v49 = vld [vmem:[%s5229_s13 + $0x54] sm:$0xe] }
  0xac   : > { %4484 = vmatpush3.bf16.msra.mxu0 %v4773_v58  ;;  %4468 = vmatmul.mubr.bf16.gmra.mxu1 %v3886_v38  ;;  %v1605_v0 = vrot.slane %v1603_v56, 5  ;;  %v1611_v58 = vshll.u32 %v3794_v44, 16  ;;  %v1623_v7 = vrot.slane %v1621_v63, 4  ;;  %v1635_v48 = vshll.u32 %v3797_v22, 16  ;;  %v4784_v38 = vld [vmem:[%s6442_s1 + $0x1c0] sm:$0xff]  }
  0xad   : > { %4516 = vmatpush3.bf16.msra.mxu1 %v4774_v42  ;;  %4485 = vmatprep.subr.bf16.mxu0 %v4775_v23  ;;  %v3796_v42 = vld [vmem:[%s5229_s13 + $0x50] sm:$0x1]  ;;  %v1719_v24 = vadd.f32 %v1718_v57, %v1704_v26  ;;  %v1634_v44 = vrot.slane %v1632_v32, 4  ;;  %v1651_v51 = vshll.u32 %v3799_v35, 16  ;;  %v4783_v57 = vld [vmem:[%s6442_s1 + $0x180] sm:$0xff]  }
  0xae   : > { %4517 = vmatprep.subr.bf16.mxu1 %v4776_v17  ;;  %v1627_v18 = vshll.u32 %v3796_v42, 16  ;;  %v1606_v19 = vsel %vm5272_vm2, %v1601_v1, %v1605_v0  ;;  %v1613_v54 = vrot.slane %v1611_v58, 5  ;;  %v1624_v29 = vor.u32 %v1623_v7, %v1619_v15  ;;  %v3855_v42 = vld [vmem:[%s5229_s13 + $0x5c] sm:$0x1]  ;;  %v3801_v0 = vld [vmem:[%s5229_s13 + $0x64] sm:$0xf] }
  0xaf   : > { %v1705_v21 = vunpack.c.l.bf16 %v1606_v19  ;;  %v3823_v11 = vcombine.low %v1596_v16, %v1606_v19  ;;  %v1637_v25 = vrot.slane %v1635_v48, 5  ;;  %v3865_v1 = vrot.slane %v3853_v49, 9  ;;  %v3856_v58 = vld [vmem:[%s5229_s13 + $0x60] sm:$0xe]  ;;  %v3949_v32 = vld [vmem:[%s5229_s13 + $0x18] sm:$0xf] }
  0xb0   : > { %4486 = vmatpush3.bf16.msra.mxu0 %v4775_v23  ;;  %v3798_v23 = vld [vmem:[%s5229_s13 + $0x58] sm:$0xf]  ;;  %v1614_v27 = vor.u32 %v1613_v54, %v1610_v6  ;;  %v1629_v46 = vrot.slane %v1627_v18, 5  ;;  %v1625_v40 = vrot.slane %v1624_v29, 4  ;;  %v3802_v6 = vld [vmem:[%s5229_s13 + $0x68] sm:$0x1] }
  0xb1   : > { %4518 = vmatpush3.bf16.msra.mxu1 %v4776_v17  ;;  %4487 = vmatprep.subr.bf16.mxu0 %v4777_v5  ;;  %v2027_v17 = vsel %vm5445_vm5, %v2025_v47, %v2026_v60  ;;  %v1720_v34 = vadd.f32 %v1719_v24, %v1705_v21  ;;  %v1641_v36 = vshll.u32 %v3798_v23, 16  ;;  %v1645_v52 = vshrl.u32 %v3798_v23, 16  ;;  %v3857_v21 = vld [vmem:[%s5229_s13 + $0x64] sm:$0xf] }
  0xb2   : > { %4519 = vmatprep.subr.bf16.mxu1 %v4778_v10  ;;  %v3887_v20 = vcombine.low %v2024_v2, %v2027_v17  ;;  %4439 = vmatprep.mubr.bf16.mxu0 %v3823_v11  ;;  %v1615_v62 = vrot.slane %v1614_v27, 4  ;;  %v1630_v53 = vsel %vm5272_vm2, %v1625_v40, %v1629_v46  ;;  %v1638_v14 = vor.u32 %v1637_v25, %v1634_v44  ;;  %v5735_v2 = vld [vmem:[%s6442_s1 + $0x238] sm:$0xff]   ;;  %v3858_v11 = vld [vmem:[%s5229_s13 + $0x68] sm:$0x1] }
  0xb3   : > { %v1643_v39 = vrot.slane %v1641_v36, 5  ;;  %v1707_v59 = vunpack.c.l.bf16 %v1630_v53  ;;  %v1647_v3 = vrot.slane %v1645_v52, 4  ;;  %v2040_v13 = vrot.slane %v3855_v42, 5  ;;  %v3952_v52 = vld [vmem:[%s5229_s13 + $0x24] sm:$0xf] }
  0xb4   : > { %4488 = vmatpush3.bf16.msra.mxu0 %v4777_v5  ;;  %4471 = vmatprep.mubr.bf16.mxu1 %v3887_v20  ;;  %v1620_v50 = vsel %vm5272_vm2, %v1615_v62, %v1619_v15  ;;  %v3854_v5 = vld [vmem:[%s5229_s13 + $0x58] sm:$0xf]  ;;  %v1639_v8 = vrot.slane %v1638_v14, 4  ;;  %v1665_v19 = vshll.u32 %v3801_v0, 16  ;;  %v1669_v27 = vshrl.u32 %v3801_v0, 16 }
  0xb5   : > { %4520 = vmatpush3.bf16.msra.mxu1 %v4778_v10  ;;  %4489 = vmatprep.subr.bf16.mxu0 %v4779_v4  ;;  %v2030_v10 = vrot.slane %v3851_v12, 5  ;;  %v1706_v56 = vunpack.c.l.bf16 %v1620_v50  ;;  %v3824_v60 = vcombine.low %v1620_v50, %v1630_v53  ;;  %v2037_v12 = vrot.slane %v3854_v5, 5  ;;  %v5756_v50 = vld [vmem:[%s5229_s13 + $0x20] sm:$0x1]  ;;  %v4785_v14 = vld [vmem:[%s5229_s13 + $0x18] sm:$0xff]  }
  0xb6   : > { %4521 = vmatprep.subr.bf16.mxu1 %v4780_v55  ;;  %v1648_v63 = vor.u32 %v1647_v3, %v1643_v39  ;;  %v1644_v26 = vsel %vm5272_vm2, %v1639_v8, %v1643_v39  ;;  %v1667_v23 = vrot.slane %v1665_v19, 5  ;;  %v1675_v46 = vshll.u32 %v3802_v6, 16 }
  0xb7   : > { %v2031_v41 = vsel %vm5445_vm5, %v3864_v28, %v2030_v10  ;;  %v2032_v43 = vrot.slane %v2030_v10, 4  ;;  %v1721_v47 = vadd.f32 %v1720_v34, %v1706_v56  ;;  %4440 = vmatmul.mubr.bf16.gmra.mxu0 %v3824_v60  ;;  %v2038_v20 = vsel %vm5445_vm5, %v3865_v1, %v2037_v12  ;;  %v5753_v34 = vld [vmem:[%s5229_s13 + $0x1c] sm:$0xf]  ;;  %v5768_v60 = vld [vmem:[%s5229_s13 + $0x2c] sm:$0x1] }
  0xb8   : > { %4490 = vmatpush3.bf16.msra.mxu0 %v4779_v4  ;;  %v1653_v4 = vrot.slane %v1651_v51, 5  ;;  %v2039_v54 = vrot.slane %v2037_v12, 4  ;;  %v1649_v15 = vrot.slane %v1648_v63, 4  ;;  %v1708_v7 = vunpack.c.l.bf16 %v1644_v26  ;;  %v5765_v51 = vld [vmem:[%s5229_s13 + $0x28] sm:$0xf] }
  0xb9   : > { %4522 = vmatpush3.bf16.msra.mxu1 %v4780_v55  ;;  %4491 = vmatprep.subr.bf16.mxu0 %v4781_v30  ;;  %v2034_v45 = vsel %vm5445_vm5, %v2032_v43, %v2033_v31  ;;  %v3800_v55 = vld [vmem:[%s5229_s13 + $0x60] sm:$0xf]  ;;  %v1722_v17 = vadd.f32 %v1721_v47, %v1707_v59  ;;  %v3866_v28 = vrot.slane %v3856_v58, 9  ;;  %v1671_v48 = vrot.slane %v1669_v27, 4 }
  0xba   : > { %4523 = vmatprep.subr.bf16.mxu1 %v4782_v9  ;;  %v3888_v61 = vcombine.low %v2031_v41, %v2034_v45  ;;  %v1656_v16 = vshrl.u32 %v3800_v55, 16  ;;  %v1659_v18 = vshll.u32 %v3800_v55, 16  ;;  %v2041_v24 = vsel %vm5445_vm5, %v2039_v54, %v2040_v13 }
  0xbb   : > { %v1723_v29 = vadd.f32 %v1722_v17, %v1708_v7  ;;  %v3889_v10 = vcombine.low %v2038_v20, %v2041_v24  ;;  %v1677_v36 = vrot.slane %v1675_v46, 5  ;;  %v2044_v40 = vrot.slane %v3857_v21, 5  ;;  %v3955_v17 = vld [vmem:[%s5229_s13 + $0x30] sm:$0xf]  ;;  %v5780_v20 = vld [vmem:[%s5229_s13 + $0x34] sm:$0xf] }
  0xbc   : > { %4492 = vmatpush3.bf16.msra.mxu0 %v4781_v30  ;;  %4472 = vmatmul.mubr.bf16.gmra.mxu1 %v3888_v61  ;;  %v1661_v22 = vrot.slane %v1659_v18, 5  ;;  %v1654_v30 = vsel %vm5272_vm2, %v1649_v15, %v1653_v4  ;;  %v2047_v41 = vrot.slane %v3858_v11, 5  ;;  %v2530_v43 = vshrl.u32 %v3949_v32, 16  ;;  %v5789_v46 = vld [vmem:[%s5229_s13 + $0x38] sm:$0x1] }
  0xbd   : > { %4524 = vmatpush3.bf16.msra.mxu1 %v4782_v9  ;;  %4493 = vmatprep.subr.bf16.mxu0 %v4783_v57  ;;  %v1658_v9 = vrot.slane %v1656_v16, 4  ;;  %v1709_v62 = vunpack.c.l.bf16 %v1654_v30  ;;  %v3825_v35 = vcombine.low %v1644_v26, %v1654_v30  ;;  %v1672_v49 = vor.u32 %v1671_v48, %v1667_v23  ;;  %v4786_v30 = vld [vmem:[%s5229_s13 + $0x24] sm:$0xff]  }
  0xbe   : > { %4525 = vmatprep.subr.bf16.mxu1 %v4784_v38  ;;  %4475 = vmatprep.mubr.bf16.mxu1 %v3889_v10  ;;  %v2533_v25 = vshll.u32 %v3949_v32, 16  ;;  %v2539_v39 = vshll.u32 %v5753_v34, 16  ;;  %v2045_v53 = vsel %vm5445_vm5, %v3866_v28, %v2044_v40  ;;  %v2046_v56 = vrot.slane %v2044_v40, 4  ;;  %v3958_v28 = vld [vmem:[%s5229_s13 + $0x3c] sm:$0xf] }
  0xbf   : > { %v1662_v31 = vor.u32 %v1661_v22, %v1658_v9  ;;  %v1724_v44 = vadd.f32 %v1723_v29, %v1709_v62  ;;  %4443 = vmatprep.mubr.bf16.mxu0 %v3825_v35  ;;  %v2532_v45 = vrot.slane %v2530_v43, 4  ;;  %v1673_v42 = vrot.slane %v1672_v49, 4  ;;  %v5795_v62 = vld [vmem:[%s5229_s13 + $0x40] sm:$0xf] }
  0xc0   : > { %4494 = vmatpush3.bf16.msra.mxu0 %v4783_v57  ;;  %v2535_v57 = vrot.slane %v2533_v25, 5  ;;  %v2541_v59 = vrot.slane %v2539_v39, 5  ;;  %v2048_v61 = vsel %vm5445_vm5, %v2046_v56, %v2047_v41  ;;  %v2543_v0 = vshrl.u32 %v5753_v34, 16  ;;  %v5807_v39 = vld [vmem:[%s5229_s13 + $0x44] sm:$0x1] }
  0xc1   : > { %4526 = vmatpush3.bf16.msra.mxu1 %v4784_v38  ;;  %4543 = vmatprep.subr.bf16.mxu0 %v5735_v2  ;;  %v1663_v38 = vrot.slane %v1662_v31, 4  ;;  %v2549_v47 = vshll.u32 %v5756_v50, 16  ;;  %v2554_v3 = vshrl.u32 %v3952_v52, 16  ;;  %v1678_v4 = vsel %vm5272_vm2, %v1673_v42, %v1677_v36 }
  0xc2   : > { %4575 = vmatprep.subr.bf16.mxu1 %v5735_v2  ;;  %v3890_v6 = vcombine.low %v2045_v53, %v2048_v61  ;;  %v2536_v58 = vor.u32 %v2535_v57, %v2532_v45  ;;  %v1711_v8 = vunpack.c.l.bf16 %v1678_v4  ;;  %v2545_v13 = vrot.slane %v2543_v0, 4 }
  0xc3   : > { %v1668_v5 = vsel %vm5272_vm2, %v1663_v38, %v1667_v23  ;;  %v2551_v16 = vrot.slane %v2549_v47, 5  ;;  %v2556_v18 = vrot.slane %v2554_v3, 4  ;;  %v2557_v19 = vshll.u32 %v3952_v52, 16  ;;  %v5802_v38 = vld [vmem:[%s6442_s1 + $0x230] sm:$0xff]   ;;  %v3961_v47 = vld [vmem:[%s5229_s13 + $0x48] sm:$0xf] }
  0xc4   : > { %v1710_v55 = vunpack.c.l.bf16 %v1668_v5  ;;  %v3826_v12 = vcombine.low %v1668_v5, %v1678_v4  ;;  %4476 = vmatmul.mubr.bf16.gmra.mxu1 %v3890_v6  ;;  %v2537_v63 = vrot.slane %v2536_v58, 4  ;;  %v2563_v26 = vshll.u32 %v5765_v51, 16  ;;  %v5817_v3 = vld [vmem:[%s5229_s13 + $0x4c] sm:$0xf] }
  0xc5   : > { %v2546_v9 = vor.u32 %v2545_v13, %v2541_v59  ;;  %v2567_v21 = vshrl.u32 %v5765_v51, 16  ;;  %v2573_v11 = vshll.u32 %v5768_v60, 16  ;;  %v2559_v15 = vrot.slane %v2557_v19, 5 }
  0xc6   : > { %v1725_v1 = vadd.f32 %v1724_v44, %v1710_v55  ;;  %4444 = vmatmul.mubr.bf16.gmra.mxu0 %v3826_v12  ;;  %v2565_v7 = vrot.slane %v2563_v26, 5  ;;  %v2578_v22 = vshrl.u32 %v3955_v17, 16  ;;  %v2542_v23 = vsel %vm5272_vm2, %v2537_v63, %v2541_v59  ;;  %v4789_v44 = vld [vmem:[%s5229_s13 + $0x30] sm:$0xff]  }
  0xc7   : > { %4495 = vmatprep.mubr.bf16.mxu0 %v4785_v14  ;;  %v2547_v24 = vrot.slane %v2546_v9, 4  ;;  %v2569_v27 = vrot.slane %v2567_v21, 4  ;;  %v2560_v29 = vor.u32 %v2559_v15, %v2556_v18  ;;  %v2581_v31 = vshll.u32 %v3955_v17, 16  ;;  %v5826_v12 = vld [vmem:[%s5229_s13 + $0x50] sm:$0x1]  ;;  %v4790_v15 = vld [vmem:[%s5229_s13 + $0x3c] sm:$0xff]  }
  0xc8   : > { %v5782_v54 = vadd.f32 %v1725_v1, %v1711_v8  ;;  %v2580_v10 = vrot.slane %v2578_v22, 4  ;;  %v2587_v32 = vshll.u32 %v5780_v20, 16  ;;  %v2575_v36 = vrot.slane %v2573_v11, 5  ;;  %v5823_v8 = vld [vmem:[%s6442_s1 + $0x228] sm:$0xff]   ;;  %v3964_v21 = vld [vmem:[%s5229_s13 + $0x54] sm:$0xf] }
  0xc9   : > { %v2552_v35 = vsel %vm5272_vm2, %v2547_v24, %v2551_v16  ;;  %v2570_v48 = vor.u32 %v2569_v27, %v2565_v7  ;;  %v2591_v40 = vshrl.u32 %v5780_v20, 16  ;;  %v2561_v43 = vrot.slane %v2560_v29, 4  ;;  %v5840_v24 = vld [vmem:[%s5229_s13 + $0x58] sm:$0xf] }
  0xca   : > { %v3989_v41 = vcombine.low %v2542_v23, %v2552_v35  ;;  %v2583_v49 = vrot.slane %v2581_v31, 5  ;;  %v2589_v25 = vrot.slane %v2587_v32, 5  ;;  %v2597_v53 = vshll.u32 %v5789_v46, 16  ;;  %v4793_v32 = vld [vmem:[%s5229_s13 + $0x48] sm:$0xff]  }
  0xcb   : > { %v2571_v52 = vrot.slane %v2570_v48, 4  ;;  %v2593_v5 = vrot.slane %v2591_v40, 4  ;;  %v2602_v56 = vshrl.u32 %v3958_v28, 16  ;;  %v2566_v45 = vsel %vm5272_vm2, %v2561_v43, %v2565_v7 }
  0xcc   : > { %4527 = vmatprep.mubr.bf16.mxu1 %v3989_v41  ;;  %v2584_v42 = vor.u32 %v2583_v49, %v2580_v10  ;;  %v2605_v55 = vshll.u32 %v3958_v28, 16  ;;  %v2611_v57 = vshll.u32 %v5795_v62, 16  ;;  %v2599_v14 = vrot.slane %v2597_v53, 5  ;;  %v5850_v10 = vld [vmem:[%s5229_s13 + $0x5c] sm:$0x1] }
  0xcd   : > { %v2576_v59 = vsel %vm5272_vm2, %v2571_v52, %v2575_v36  ;;  %v2594_v61 = vor.u32 %v2593_v5, %v2589_v25  ;;  %v2604_v0 = vrot.slane %v2602_v56, 4  ;;  %v2615_v16 = vshrl.u32 %v5795_v62, 16 }
  0xce   : > { %4496 = vmatmul.mubr.bf16.vlgmr.msra.gmra.mxu0 %v4786_v30  ;;  %v3990_v4 = vcombine.low %v2566_v45, %v2576_v59  ;;  %v2585_v1 = vrot.slane %v2584_v42, 4  ;;  %v2607_v6 = vrot.slane %v2605_v55, 5  ;;  %v2613_v58 = vrot.slane %v2611_v57, 5  ;;  %v4794_v57 = vld [vmem:[%s5229_s13 + $0x54] sm:$0xff]  }
  0xcf   : > { %4544 = vmatpush3.bf16.msra.mxu0 %v5735_v2  ;;  %4499 = vmatprep.mubr.bf16.mxu0 %v4789_v44  ;;  %v2595_v13 = vrot.slane %v2594_v61, 4  ;;  %v2621_v17 = vshll.u32 %v5807_v39, 16  ;;  %v2626_v63 = vshrl.u32 %v3961_v47, 16  ;;  %v2629_v26 = vshll.u32 %v3961_v47, 16 }
  0xd0   : > { %4545 = vmatprep.subr.bf16.mxu0 %v5802_v38  ;;  %4528 = vmatmul.mubr.bf16.vlgmr.msra.gmra.mxu1 %v3990_v4  ;;  %v2590_v18 = vsel %vm5272_vm2, %v2585_v1, %v2589_v25  ;;  %v2608_v19 = vor.u32 %v2607_v6, %v2604_v0  ;;  %v2635_v9 = vshll.u32 %v5817_v3, 16  ;;  %v2617_v7 = vrot.slane %v2615_v16, 4  ;;  %v4795_v6 = vld [vmem:[%s6442_s1 + $0x218] sm:$0xff]  }
  0xd1   : > { %4583 = vmatpush3.bf16.msra.mxu1 %v5735_v2  ;;  %v2600_v11 = vsel %vm5272_vm2, %v2595_v13, %v2599_v14  ;;  %v2623_v22 = vrot.slane %v2621_v17, 5  ;;  %v2628_v23 = vrot.slane %v2626_v63, 4  ;;  %v5847_v2 = vld [vmem:[%s6442_s1 + $0x220] sm:$0xff]   ;;  %v2631_v30 = vrot.slane %v2629_v26, 5  ;;  %v5879_v13 = vld [vmem:[%s5229_s13 + $0x68] sm:$0x1] }
  0xd2   : > { %4576 = vmatprep.subr.bf16.mxu1 %v5802_v38  ;;  %v3991_v27 = vcombine.low %v2590_v18, %v2600_v11  ;;  %v2609_v28 = vrot.slane %v2608_v19, 4  ;;  %v2637_v29 = vrot.slane %v2635_v9, 5  ;;  %v2618_v31 = vor.u32 %v2617_v7, %v2613_v58  ;;  %v3967_v14 = vld [vmem:[%s5229_s13 + $0x60] sm:$0xf]  ;;  %v5891_v9 = vld [vmem:[%s6442_s1 + $0x210] sm:$0xff]  }
  0xd3   : > { %4546 = vmatpush3.bf16.msra.mxu0 %v5802_v38  ;;  %v2639_v35 = vshrl.u32 %v5817_v3, 16  ;;  %v2645_v48 = vshll.u32 %v5826_v12, 16  ;;  %v2650_v36 = vshrl.u32 %v3964_v21, 16  ;;  %v2632_v41 = vor.u32 %v2631_v30, %v2628_v23 }
  0xd4   : > { %4547 = vmatprep.subr.bf16.mxu0 %v5823_v8  ;;  %4531 = vmatprep.mubr.bf16.mxu1 %v3991_v27  ;;  %v2614_v40 = vsel %vm5272_vm2, %v2609_v28, %v2613_v58  ;;  %v2653_v43 = vshll.u32 %v3964_v21, 16  ;;  %v2659_v44 = vshll.u32 %v5840_v24, 16  ;;  %v2619_v49 = vrot.slane %v2618_v31, 4  ;;  %v5876_v58 = vld [vmem:[%s5229_s13 + $0x64] sm:$0xf] }
  0xd5   : > { %4584 = vmatpush3.bf16.msra.mxu1 %v5802_v38  ;;  %v2641_v25 = vrot.slane %v2639_v35, 4  ;;  %v2647_v52 = vrot.slane %v2645_v48, 5  ;;  %v2652_v5 = vrot.slane %v2650_v36, 4  ;;  %v2633_v53 = vrot.slane %v2632_v41, 4  ;;  %v3970_v27 = vld [vmem:[%s5229_s13 + $0x6c] sm:$0xf] }
  0xd6   : > { %4500 = vmatmul.mubr.bf16.gmra.mxu0 %v4790_v15  ;;  %4577 = vmatprep.subr.bf16.mxu1 %v5823_v8  ;;  %v2655_v56 = vrot.slane %v2653_v43, 5  ;;  %v2661_v45 = vrot.slane %v2659_v44, 5  ;;  %v2663_v42 = vshrl.u32 %v5840_v24, 16  ;;  %v2624_v38 = vsel %vm5272_vm2, %v2619_v49, %v2623_v22  ;;  %v4797_v15 = vld [vmem:[%s5229_s13 + $0x60] sm:$0xff]   ;;  %v5907_v35 = vld [vmem:[%s5229_s13 + $0x74] sm:$0x1] }
  0xd7   : > { %4548 = vmatpush3.bf16.msra.mxu0 %v5823_v8  ;;  %4503 = vmatprep.mubr.bf16.mxu0 %v4793_v32  ;;  %v2642_v55 = vor.u32 %v2641_v25, %v2637_v29  ;;  %v2669_v59 = vshll.u32 %v5850_v10, 16  ;;  %v3000_v61 = vrot.slane %v5840_v24, 5  ;;  %v3992_v0 = vcombine.low %v2614_v40, %v2624_v38  ;;  %v5904_v32 = vld [vmem:[%s5229_s13 + $0x70] sm:$0xf] }
  0xd8   : > { %4549 = vmatprep.subr.bf16.mxu0 %v5847_v2  ;;  %v2638_v47 = vsel %vm5272_vm2, %v2633_v53, %v2637_v29  ;;  %v2656_v4 = vor.u32 %v2655_v56, %v2652_v5  ;;  %v2665_v1 = vrot.slane %v2663_v42, 4  ;;  %v3003_v18 = vrot.slane %v5850_v10, 5  ;;  %v4798_v53 = vld [vmem:[%s5229_s13 + $0x6c] sm:$0xff]  }
  0xd9   : > { %4585 = vmatpush3.bf16.msra.mxu1 %v5823_v8  ;;  %v2643_v16 = vrot.slane %v2642_v55, 4  ;;  %v2671_v17 = vrot.slane %v2669_v59, 5  ;;  %v5884_v63 = vrot.slane %v3000_v61, 4  ;;  %v2674_v8 = vshrl.u32 %v3967_v14, 16  ;;  %v4005_v59 = vld [vmem:[%s5229_s13 + $0x18] sm:$0xe] }
  0xda   : > { %4532 = vmatmul.mubr.bf16.gmra.mxu1 %v3992_v0  ;;  %4578 = vmatprep.subr.bf16.mxu1 %v5847_v2  ;;  %v2657_v19 = vrot.slane %v2656_v4, 4  ;;  %v2666_v26 = vor.u32 %v2665_v1, %v2661_v45  ;;  %v2677_v21 = vshll.u32 %v3967_v14, 16  ;;  %v2683_v7 = vshll.u32 %v5876_v58, 16  ;;  %v4009_v1 = vld [vmem:[%s5229_s13 + $0x48] sm:$0xe] }
  0xdb   : > { %4550 = vmatpush3.bf16.msra.mxu0 %v5847_v2  ;;  %v2648_v11 = vsel %vm5272_vm2, %v2643_v16, %v2647_v52  ;;  %v2687_v22 = vshrl.u32 %v5876_v58, 16  ;;  %v2693_v23 = vshll.u32 %v5879_v13, 16  ;;  %v2676_v31 = vrot.slane %v2674_v8, 4  ;;  %v4006_v8 = vld [vmem:[%s5229_s13 + $0x24] sm:$0xe] }
  0xdc   : > { %v3993_v28 = vcombine.low %v2638_v47, %v2648_v11  ;;  %v2662_v30 = vsel %vm5272_vm2, %v2657_v19, %v2661_v45  ;;  %v2667_v29 = vrot.slane %v2666_v26, 4  ;;  %4551 = vmatprep.subr.bf16.mxu0 %v4795_v6  ;;  %v2679_v48 = vrot.slane %v2677_v21, 5  ;;  %v4799_v45 = vld [vmem:[%s6442_s1 + $0x208] sm:$0xff]  }
  0xdd   : > { %4586 = vmatpush3.bf16.msra.mxu1 %v5847_v2  ;;  %v2685_v36 = vrot.slane %v2683_v7, 5  ;;  %v2689_v40 = vrot.slane %v2687_v22, 4  ;;  %v2695_v41 = vrot.slane %v2693_v23, 5  ;;  %v2698_v44 = vshrl.u32 %v3970_v27, 16 }
  0xde   : > { %4504 = vmatmul.mubr.bf16.gmra.mxu0 %v4794_v57  ;;  %4535 = vmatprep.mubr.bf16.mxu1 %v3993_v28  ;;  %v2672_v43 = vsel %vm5272_vm2, %v2667_v29, %v2671_v17  ;;  %v2701_v49 = vshll.u32 %v3970_v27, 16  ;;  %v2707_v25 = vshll.u32 %v5904_v32, 16  ;;  %v2680_v2 = vor.u32 %v2679_v48, %v2676_v31  ;;  %v4010_v31 = vld [vmem:[%s5229_s13 + $0x54] sm:$0xe] }
  0xdf   : > { %4579 = vmatprep.subr.bf16.mxu1 %v4795_v6  ;;  %v3994_v52 = vcombine.low %v2662_v30, %v2672_v43  ;;  %4552 = vmatpush3.bf16.msra.mxu0 %v4795_v6  ;;  %v2690_v5 = vor.u32 %v2689_v40, %v2685_v36  ;;  %v2711_v56 = vshrl.u32 %v5904_v32, 16  ;;  %v2700_v42 = vrot.slane %v2698_v44, 4 }
  0xe0   : > { %4507 = vmatprep.mubr.bf16.mxu0 %v4797_v15  ;;  %4553 = vmatprep.subr.bf16.mxu0 %v5891_v9  ;;  %v2703_v38 = vrot.slane %v2701_v49, 5  ;;  %v2709_v55 = vrot.slane %v2707_v25, 5  ;;  %v2717_v57 = vshll.u32 %v5907_v35, 16  ;;  %v2681_v14 = vrot.slane %v2680_v2, 4 }
  0xe1   : > { %4587 = vmatpush3.bf16.msra.mxu1 %v4795_v6  ;;  %v2691_v0 = vrot.slane %v2690_v5, 4  ;;  %v2713_v47 = vrot.slane %v2711_v56, 4  ;;  %v4013_v4 = vrot.slane %v4005_v59, 9  ;;  %v2965_v19 = vrot.slane %v5753_v34, 5  ;;  %v4800_v34 = vld [vmem:[%s6442_s1 + $0x200] sm:$0xff]  }
  0xe2   : > { %4536 = vmatmul.mubr.bf16.gmra.mxu1 %v3994_v52  ;;  %4580 = vmatprep.subr.bf16.mxu1 %v5891_v9  ;;  %v2704_v16 = vor.u32 %v2703_v38, %v2700_v42  ;;  %v2719_v17 = vrot.slane %v2717_v57, 5  ;;  %v2968_v26 = vrot.slane %v5756_v50, 5  ;;  %v2686_v6 = vsel %vm5272_vm2, %v2681_v14, %v2685_v36  ;;  %v4008_v56 = vld [vmem:[%s5229_s13 + $0x3c] sm:$0xe] }
  0xe3   : > { %4554 = vmatpush3.bf16.msra.mxu0 %v5891_v9  ;;  %v2696_v21 = vsel %vm5272_vm2, %v2691_v0, %v2695_v41  ;;  %v2714_v11 = vor.u32 %v2713_v47, %v2709_v55  ;;  %v4017_v15 = vrot.slane %v4009_v1, 9  ;;  %v2966_v50 = vsel %vm5445_vm5, %v4013_v4, %v2965_v19  ;;  %v4007_v41 = vld [vmem:[%s5229_s13 + $0x30] sm:$0xe]  ;;  %v4012_v0 = vld [vmem:[%s5229_s13 + $0x6c] sm:$0xe] }
  0xe4   : > { %v3995_v7 = vcombine.low %v2686_v6, %v2696_v21  ;;  %v2705_v22 = vrot.slane %v2704_v16, 4  ;;  %4555 = vmatprep.subr.bf16.mxu0 %v4799_v45  ;;  %v2967_v23 = vrot.slane %v2965_v19, 4  ;;  %v2993_v28 = vrot.slane %v5817_v3, 5 }
  0xe5   : > { %4588 = vmatpush3.bf16.msra.mxu1 %v5891_v9  ;;  %v2715_v27 = vrot.slane %v2714_v11, 4  ;;  %v2996_v30 = vrot.slane %v5826_v12, 5  ;;  %v4014_v29 = vrot.slane %v4006_v8, 9  ;;  %v2972_v40 = vrot.slane %v5765_v51, 5 }
  0xe6   : > { %4508 = vmatmul.mubr.bf16.gmra.mxu0 %v4798_v53  ;;  %4539 = vmatprep.mubr.bf16.mxu1 %v3995_v7  ;;  %v2710_v48 = vsel %vm5272_vm2, %v2705_v22, %v2709_v55  ;;  %v2969_v36 = vsel %vm5445_vm5, %v2967_v23, %v2968_v26  ;;  %v2975_v9 = vrot.slane %v5768_v60, 5  ;;  %v2994_v43 = vsel %vm5445_vm5, %v4017_v15, %v2993_v28  ;;  %v4011_v53 = vld [vmem:[%s5229_s13 + $0x60] sm:$0xe]  ;;  %s6059_s13 = sshll.u32 %s4991_s28, 4 }
  0xe7   : > { %4581 = vmatprep.subr.bf16.mxu1 %v4799_v45  ;;  %v2720_v3 = vsel %vm5272_vm2, %v2715_v27, %v2719_v17  ;;  %4556 = vmatpush3.bf16.msra.mxu0 %v4799_v45  ;;  %v4037_v12 = vcombine.low %v2966_v50, %v2969_v36  ;;  %v2995_v44 = vrot.slane %v2993_v28, 4  ;;  %v2973_v25 = vsel %vm5445_vm5, %v4014_v29, %v2972_v40  ;;  %s3464_s11 = scalar_lea.hbm %s6411_s6, %s6059_s13 }
  0xe8   : > { %v3996_v49 = vcombine.low %v2710_v48, %v2720_v3  ;;  %4557 = vmatprep.subr.bf16.mxu0 %v4800_v34  ;;  %v2974_v51 = vrot.slane %v2972_v40, 4  ;;  %v4018_v52 = vrot.slane %v4010_v31, 9  ;;  %v3004_v60 = vsel %vm5445_vm5, %v5884_v63, %v3003_v18 }
  0xe9   : > { %4589 = vmatpush3.bf16.msra.mxu1 %v4799_v45  ;;  %4559 = vmatprep.mubr.bf16.mxu0 %v4037_v12  ;;  %v2997_v37 = vsel %vm5445_vm5, %v2995_v44, %v2996_v30  ;;  %v4015_v2 = vrot.slane %v4007_v41, 9  ;;  %v2979_v5 = vrot.slane %v5780_v20, 5  ;;  %v2982_v38 = vrot.slane %v5789_v46, 5 }
  0xea   : > { %4540 = vmatmul.mubr.bf16.gmra.mxu1 %v3996_v49  ;;  %4582 = vmatprep.subr.bf16.mxu1 %v4800_v34  ;;  %v4041_v42 = vcombine.low %v2994_v43, %v2997_v37  ;;  %v2976_v45 = vsel %vm5445_vm5, %v2974_v51, %v2975_v9  ;;  %v3001_v10 = vsel %vm5445_vm5, %v4018_v52, %v3000_v61  ;;  %v4019_v55 = vrot.slane %v4011_v53, 9 }
  0xeb   : > { %4558 = vmatpush3.bf16.msra.mxu0 %v4800_v34  ;;  %v4038_v63 = vcombine.low %v2973_v25, %v2976_v45  ;;  %v2980_v20 = vsel %vm5445_vm5, %v4015_v2, %v2979_v5  ;;  %v2981_v18 = vrot.slane %v2979_v5, 4  ;;  %v3007_v57 = vrot.slane %v5876_v58, 5 }
  0xec   : > { %4567 = vmatprep.mubr.bf16.mxu1 %v4041_v42  ;;  %v3010_v59 = vrot.slane %v5879_v13, 5  ;;  %v4016_v14 = vrot.slane %v4008_v56, 9  ;;  %v4042_v24 = vcombine.low %v3001_v10, %v3004_v60  ;;  %v2986_v46 = vrot.slane %v5795_v62, 5 }
  0xed   : > { %4590 = vmatpush3.bf16.msra.mxu1 %v4800_v34  ;;  %v2983_v61 = vsel %vm5445_vm5, %v2981_v18, %v2982_v38  ;;  %v2989_v47 = vrot.slane %v5807_v39, 5  ;;  %v3008_v1 = vsel %vm5445_vm5, %v4019_v55, %v3007_v57  ;;  %v3009_v16 = vrot.slane %v3007_v57, 4 }
  0xee   : > { %4560 = vmatmul.mubr.bf16.vlgmr.msra.gmra.mxu0 %v4038_v63  ;;  %v4039_v4 = vcombine.low %v2980_v20, %v2983_v61  ;;  %v3014_v58 = vrot.slane %v5904_v32, 5  ;;  %v2987_v13 = vsel %vm5445_vm5, %v4016_v14, %v2986_v46  ;;  %v2988_v17 = vrot.slane %v2986_v46, 4 }
  0xef   : > { %v4020_v19 = vrot.slane %v4012_v0, 9  ;;  %v3017_v26 = vrot.slane %v5907_v35, 5  ;;  %v3011_v62 = vsel %vm5445_vm5, %v3009_v16, %v3010_v59 }
  0xf0   : > { %4563 = vmatprep.mubr.bf16.mxu0 %v4039_v4  ;;  %v3016_v39 = vrot.slane %v3014_v58, 4  ;;  %v4043_v8 = vcombine.low %v3008_v1, %v3011_v62  ;;  %v2990_v6 = vsel %vm5445_vm5, %v2988_v17, %v2989_v47 }
  0xf1   : > { %v4040_v21 = vcombine.low %v2987_v13, %v2990_v6  ;;  %v3015_v32 = vsel %vm5445_vm5, %v4020_v19, %v3014_v58 }
  0xf2   : > { %4568 = vmatmul.mubr.bf16.vlgmr.msra.gmra.mxu1 %v4042_v24  ;;  %v3018_v11 = vsel %vm5445_vm5, %v3016_v39, %v3017_v26 }
  0xf3   : > { %4571 = vmatprep.mubr.bf16.mxu1 %v4043_v8  ;;  %v4044_v35 = vcombine.low %v3015_v32, %v3018_v11 }
  0xf6   : > { %4564 = vmatmul.mubr.bf16.gmra.mxu0 %v4040_v21 }
  0xfa   : > { %4572 = vmatmul.mubr.bf16.gmra.mxu1 %v4044_v35 }
 0x123   : > { %v4305_v15 = vpop.f32.mrf.mxu0 }
 0x124   : > { %v4337_v7 = vpop.f32.mrf.mxu1 }
 0x125   : > { %v870_v22 = vadd.f32 %v4337_v7, %v4305_v15  ;;  %v668_v34 = vpop.f32.mrf.mxu0 }
 0x126   : > { %v861_v50 = vpop.f32.mrf.mxu1 }
 0x127   : > { %v862_v23 = vadd.f32 %v861_v50, %v668_v34  ;;  %v4306_v27 = vpop.f32.mrf.mxu0 }
 0x128   : > { %v4338_v28 = vpop.f32.mrf.mxu1 }
 0x129   : > { %v873_v30 = vadd.f32 %v4338_v28, %v4306_v27  ;;  %v671_v29 = vpop.f32.mrf.mxu0 }
 0x12a   : > { %v864_v31 = vpop.f32.mrf.mxu1 }
 0x12b   : > { %v865_v48 = vadd.f32 %v864_v31, %v671_v29  ;;  %v4309_v36 = vpop.f32.mrf.mxu0 }
 0x12c   : > { %v4341_v40 = vpop.f32.mrf.mxu1 }
 0x12d   : > { %v886_v9 = vadd.f32 %v4341_v40, %v4309_v36  ;;  %v684_v33 = vpop.f32.mrf.mxu0 }
 0x12e   : > { %v877_v41 = vpop.f32.mrf.mxu1 }
 0x12f   : > { %v878_v3 = vadd.f32 %v877_v41, %v684_v33  ;;  %v4310_v12 = vpop.f32.mrf.mxu0 }
 0x130   : > { %v4342_v43 = vpop.f32.mrf.mxu1 }
 0x131   : > { %v889_v44 = vadd.f32 %v4342_v43, %v4310_v12  ;;  %v687_v49 = vpop.f32.mrf.mxu0 }
 0x132   : > { %v880_v25 = vpop.f32.mrf.mxu1 }
 0x133   : > { %v881_v51 = vadd.f32 %v880_v25, %v687_v49  ;;  %v4313_v37 = vpop.f32.mrf.mxu0 }
 0x134   : > { %v4345_v52 = vpop.f32.mrf.mxu1 }
 0x135   : > { %v902_v2 = vadd.f32 %v4345_v52, %v4313_v37  ;;  %v700_v5 = vpop.f32.mrf.mxu0 }
 0x136   : > { %v893_v60 = vpop.f32.mrf.mxu1 }
 0x137   : > { %v894_v56 = vadd.f32 %v893_v60, %v700_v5  ;;  %v4314_v42 = vpop.f32.mrf.mxu0 }
 0x138   : > { %v4346_v53 = vpop.f32.mrf.mxu1 }
 0x139   : > { %v905_v10 = vadd.f32 %v4346_v53, %v4314_v42  ;;  %v703_v38 = vpop.f32.mrf.mxu0 }
 0x13a   : > { %v896_v45 = vpop.f32.mrf.mxu1 }
 0x13b   : > { %v897_v20 = vadd.f32 %v896_v45, %v703_v38  ;;  %v4317_v55 = vpop.f32.mrf.mxu0 }
 0x13c   : > { %v4349_v63 = vpop.f32.mrf.mxu1 }
 0x13d   : > { %v918_v59 = vadd.f32 %v4349_v63, %v4317_v55  ;;  %v716_v14 = vpop.f32.mrf.mxu0 }
 0x13e   : > { %v909_v18 = vpop.f32.mrf.mxu1 }
 0x13f   : > { %v910_v24 = vadd.f32 %v909_v18, %v716_v14  ;;  %v4318_v61 = vpop.f32.mrf.mxu0 }
 0x140   : > { %v4350_v57 = vpop.f32.mrf.mxu1 }
 0x141   : > { %v921_v47 = vadd.f32 %v4350_v57, %v4318_v61  ;;  %v719_v4 = vpop.f32.mrf.mxu0 }
 0x142   : > { %v912_v0 = vpop.f32.mrf.mxu1 }
 0x143   : > { %v5993_v16 = vadd.f32 %v912_v0, %v719_v4  ;;  %v4369_v58 = vpop.f32.mrf.mxu0 }
 0x144   : > { %v4401_v46 = vpop.f32.mrf.mxu1  ;;  %v1203_v17 = vadd.f32 %v4369_v58, %v870_v22 }
 0x145   : > { %v1138_v19 = vpop.f32.mrf.mxu0 }
 0x146   : > { %v1384_v1 = vpop.f32.mrf.mxu1  ;;  %v5995_v62 = vadd.f32 %v4401_v46, %v1203_v17  ;;  %v1201_v39 = vadd.f32 %v1138_v19, %v862_v23 }
 0x147   : > { %v4370_v8 = vpop.f32.mrf.mxu0 }
 0x148   : > { %v4402_v13 = vpop.f32.mrf.mxu1  ;;  %v5997_v21 = vadd.f32 %v1384_v1, %v1201_v39  ;;  %v1204_v32 = vadd.f32 %v4370_v8, %v873_v30 }
 0x149   : > { %v1141_v11 = vpop.f32.mrf.mxu0 }
 0x14a   : > { %v1387_v26 = vpop.f32.mrf.mxu1  ;;  %v5999_v15 = vadd.f32 %v4402_v13, %v1204_v32  ;;  %v1202_v7 = vadd.f32 %v1141_v11, %v865_v48  ;;  %v1727_v13 = vrot.slane %v5782_v54, 4 }
 0x14b   : > { %v4373_v34 = vpop.f32.mrf.mxu0 }
 0x14c   : > { %v4405_v6 = vpop.f32.mrf.mxu1  ;;  %v6001_v27 = vadd.f32 %v1387_v26, %v1202_v7  ;;  %v1207_v22 = vadd.f32 %v4373_v34, %v886_v9 }
 0x14d   : > { %v1154_v28 = vpop.f32.mrf.mxu0 }
 0x14e   : > { %v1400_v35 = vpop.f32.mrf.mxu1  ;;  %v1453_v31 = vadd.f32 %v4405_v6, %v1207_v22  ;;  %v1205_v36 = vadd.f32 %v1154_v28, %v878_v3  ;;  %v1695_v28 = vld [vmem:[%s5191_s8] sm:$0x1] }
 0x14f   : > { %v4374_v23 = vpop.f32.mrf.mxu0 }
 0x150   : > { %v4406_v50 = vpop.f32.mrf.mxu1  ;;  %v6003_v33 = vadd.f32 %v1400_v35, %v1205_v36  ;;  %v1208_v41 = vadd.f32 %v4374_v23, %v889_v44 }
 0x151   : > { %v1157_v30 = vpop.f32.mrf.mxu0 }
 0x152   : > { %v1403_v29 = vpop.f32.mrf.mxu1  ;;  %v6005_v43 = vadd.f32 %v4406_v50, %v1208_v41  ;;  %v1206_v49 = vadd.f32 %v1157_v30, %v881_v51 }
 0x153   : > { %v4377_v48 = vpop.f32.mrf.mxu0 }
 0x154   : > { %v4409_v40 = vpop.f32.mrf.mxu1  ;;  %v6007_v52 = vadd.f32 %v1403_v29, %v1206_v49  ;;  %v1211_v37 = vadd.f32 %v4377_v48, %v902_v2 }
 0x155   : > { %v1170_v9 = vpop.f32.mrf.mxu0 }
 0x156   : > { %v1416_v12 = vpop.f32.mrf.mxu1  ;;  %v6009_v5 = vadd.f32 %v4409_v40, %v1211_v37  ;;  %v1209_v3 = vadd.f32 %v1170_v9, %v894_v56 }
 0x157   : > { %v4378_v53 = vpop.f32.mrf.mxu0 }
 0x158   : > { %v4410_v25 = vpop.f32.mrf.mxu1  ;;  %v6011_v45 = vadd.f32 %v1416_v12, %v1209_v3  ;;  %v1212_v44 = vadd.f32 %v4378_v53, %v905_v10 }
 0x159   : > { %v1173_v38 = vpop.f32.mrf.mxu0 }
 0x15a   : > { %v1419_v60 = vpop.f32.mrf.mxu1  ;;  %v6013_v18 = vadd.f32 %v4410_v25, %v1212_v44  ;;  %v1210_v51 = vadd.f32 %v1173_v38, %v897_v20 }
 0x15b   : > { %v4381_v55 = vpop.f32.mrf.mxu0 }
 0x15c   : > { %v4413_v42 = vpop.f32.mrf.mxu1  ;;  %v6015_v14 = vadd.f32 %v1419_v60, %v1210_v51  ;;  %v1215_v2 = vadd.f32 %v4381_v55, %v918_v59 }
 0x15d   : > { %v1186_v0 = vpop.f32.mrf.mxu0 }
 0x15e   : > { %v1432_v63 = vpop.f32.mrf.mxu1  ;;  %v6017_v46 = vadd.f32 %v4413_v42, %v1215_v2  ;;  %v1213_v56 = vadd.f32 %v1186_v0, %v910_v24  ;;  %v1728_v24 = vadd.f32 %v1727_v13, %v5782_v54 }
 0x15f   : > { %v4382_v4 = vpop.f32.mrf.mxu0 }
 0x160   : > { %v4414_v57 = vpop.f32.mrf.mxu1  ;;  %v6019_v1 = vadd.f32 %v1432_v63, %v1213_v56  ;;  %v1216_v58 = vadd.f32 %v4382_v4, %v921_v47  ;;  %v1729_v32 = vrot.slane %v1728_v24, 2 }
 0x161   : > { %v1189_v17 = vpop.f32.mrf.mxu0 }
 0x162   : > { %v1435_v61 = vpop.f32.mrf.mxu1  ;;  %v6024_v20 = vadd.f32 %v4414_v57, %v1216_v58  ;;  %v1214_v19 = vadd.f32 %v1189_v17, %v5993_v16  ;;  %v1730_v35 = vadd.f32 %v1729_v32, %v1728_v24 }
 0x163   : > { %v6029_v59 = vpop.f32.mrf.mxu0 }
 0x164   : > { %v6021_v10 = vpop.f32.mrf.mxu1  ;;  %v6031_v39 = vadd.f32 %v1435_v61, %v1214_v19  ;;  %v1731_v7 = vrot.slane %v1730_v35, 1 }
 0x165   : > { %v6034_v8 = vpop.f32.mrf.mxu0 }
 0x166   : > { %v6027_v26 = vpop.f32.mrf.mxu1  ;;  %6447 = vst [vmem:[#allocation22_spill] sm:$0xff] %v6031_v39  ;;  %v1732_v54 = vadd.f32 %v1731_v7, %v1730_v35 }
 0x167   : > { %v6038_v6 = vpop.f32.mrf.mxu0 }
 0x168   : > { %v6036_v47 = vpop.f32.mrf.mxu1  ;;  %v1733_v23 = vadd.f32 %v1732_v54, %v1695_v28 }
 0x169   : > { %v6042_v16 = vpop.f32.mrf.mxu0 }
 0x16a   : > { %v6040_v11 = vpop.f32.mrf.mxu1  ;;  %1734 = vst [vmem:[%s5191_s8] sm:$0x1] %v1733_v23 }
 0x16b   : > { %v4437_v50 = vpop.f32.mrf.mxu0 }
 0x16c   : > { %v6044_v34 = vpop.f32.mrf.mxu1  ;;  %v6046_v22 = vadd.f32 %v4437_v50, %v1453_v31 }
 0x16d   : > { %v6049_v29 = vpop.f32.mrf.mxu0 }
 0x16e   : > { %v6051_v36 = vpop.f32.mrf.mxu1 }
 0x16f   : > { %v6054_v40 = vpop.f32.mrf.mxu0 }
 0x170   : > { %v6056_v41 = vpop.f32.mrf.mxu1 }
 0x171   : > { %v6061_v30 = vpop.f32.mrf.mxu0 }
 0x172   : > { %v6063_v12 = vpop.f32.mrf.mxu1 }
 0x173   : > { %4814 = shalt.err (!%p4811_p1)
}
 0x174   : > { %s4815_s23 = scalar_lea.hbm %s3464_s11, 16  ;;  %s4819_s21 = scalar_lea.hbm %s6411_s6, 32 }
 0x175   : > { %p4816_p4 = scmp.ne.s32.totalorder %s3464_s11, %s4815_s23  ;;  %p4820_p6 = scmp.lt.s32.totalorder %s3464_s11, %s6411_s6 }
 0x176   : > { %p4821_p8 = scmp.lt.s32.totalorder %s4819_s21, %s4815_s23 }
 0x177   : > { %p4817_p2 = pnand %p4816_p4, %p5151_p12 }
 0x178   : > { %p4822_p13 = por %p4821_p8, %p4820_p6 }
 0x179   : > { %p4818_p5 = pneg %p4817_p2 }
 0x17b   : > { %p4823_p7 = pnand %p4822_p13, %p4818_p5 }
 0x17d   : > { %4826 = shalt.err (!%p4823_p7)
}
 0x17e   : > { %4595 = dma.vmem_to_hbm [thread:$0]  (%p5151_p12), %s3467_s16, 16, %s3464_s11, %s3410_s12   ;;  %v4441_v31 = vpop.f32.mrf.mxu0  ;;  %v6083_v49 = vpop.f32.mrf.mxu1 }
 0x17f   : > { %s4071_s16 = sshll.u32 %s4987_s27, 4  ;;  %s4072_s12 = sshll.u32 %s4991_s28, 5 }
 0x180   : > { %v6085_v48 = vpop.f32.mrf.mxu1  ;;  %v1898_v25 = vpop.f32.mrf.mxu0  ;;  %s3421_s27 = sadd.s32 %s4072_s12, %s4071_s16  ;;  %s3424_s28 = sshll.u32 %s5182_s30, 4  ;;  %s6240_s28 = int_to_ptr.vmem [resolvable:$true] %s3424_s28 }
 0x181   : > { %s4073_s17 = sshll.u32 %s3421_s27, 6  ;;  %s6473_s23 = sand.u32 1, %s4979_s25  }
 0x182   : > { %v6087_v37 = vpop.f32.mrf.mxu1  ;;  %v4442_v9 = vpop.f32.mrf.mxu0  ;;  %s6246_s0 = scalar_lea.hbm %s6408_s3, %s4073_s17  ;;  %s6251_s8 = scalar_lea.sflag [#allocation3], %s6473_s23 }
 0x183   : > { %s4827_s14 = scalar_lea.vmem %s6240_s28, 1024  ;;  %s5007_s21 = smov [#allocation2]  }
 0x184   : > { %v6089_v60 = vpop.f32.mrf.mxu1  ;;  %v1901_v3 = vpop.f32.mrf.mxu0  ;;  %p4828_p7 = scmp.ne.s32.totalorder %s6240_s28, %s4827_s14  ;;  %s4831_s22 = sshll.u32 %s5007_s21, 4  ;;  %s4832_s22 = int_to_ptr.vmem [resolvable:$false] %s4831_s22 }
 0x185   : > { %s4833_s1 = scalar_lea.vmem %s4832_s22, 2048  ;;  %p4834_p10 = scmp.lt.s32.totalorder %s6240_s28, %s4832_s22 }
 0x186   : > { %v6091_v53 = vpop.f32.mrf.mxu1  ;;  %v4445_v42 = vpop.f32.mrf.mxu0  ;;  %p4829_p13 = pnand %p4828_p7, %p5122_p3  ;;  %p4835_p11 = scmp.lt.s32.totalorder %s4833_s1, %s4827_s14 }
 0x188   : > { %v6093_v44 = vpop.f32.mrf.mxu1  ;;  %v1914_v38 = vpop.f32.mrf.mxu0  ;;  %p4830_p9 = pneg %p4829_p13  ;;  %p4836_p0 = por %p4835_p11, %p4834_p10 }
 0x189   : > { %6448 = vst [vmem:[#allocation23_spill] sm:$0xff] %v6093_v44 }
 0x18a   : > { %v6095_v63 = vpop.f32.mrf.mxu1  ;;  %v4446_v51 = vpop.f32.mrf.mxu0  ;;  %p4837_p1 = pnand %p4836_p0, %p4830_p9 }
 0x18b   : > { %6449 = vst [vmem:[#allocation24_spill] sm:$0xff] %v6095_v63 }
 0x18c   : > { %v6097_v55 = vpop.f32.mrf.mxu0  ;;  %v6099_v57 = vpop.f32.mrf.mxu1 }
 0x18d   : > { %6450 = vst [vmem:[#allocation25_spill] sm:$0xff] %v6097_v55  ;;  %6451 = vst [vmem:[#allocation26_spill] sm:$0xff] %v6099_v57 }
 0x18e   : > { %v4497_v2 = vpop.f32.mrf.mxu0 }
 0x190   : > { %v2426_v0 = vpop.f32.mrf.mxu0  ;;  %v6101_v61 = vpop.f32.mrf.mxu1 }
 0x191   : > { %6452 = vst [vmem:[#allocation27_spill] sm:$0xff] %v6101_v61 }
 0x192   : > { %v4498_v56 = vpop.f32.mrf.mxu0  ;;  %v2852_v4 = vpop.f32.mrf.mxu1 }
 0x194   : > { %v2429_v58 = vpop.f32.mrf.mxu0  ;;  %v6103_v13 = vpop.f32.mrf.mxu1 }
 0x195   : > { %6453 = vst [vmem:[#allocation28_spill] sm:$0xff] %v6103_v13 }
 0x196   : > { %v4501_v17 = vpop.f32.mrf.mxu0  ;;  %v6105_v19 = vpop.f32.mrf.mxu1 }
 0x197   : > { %6454 = vst [vmem:[#allocation29_spill] sm:$0xff] %v6105_v19  ;;  %v1931_v19 = vadd.f32 %v6029_v59, %v5995_v62  ;;  %v1934_v59 = vadd.f32 %v6061_v30, %v6007_v52  ;;  %v1943_v52 = vadd.f32 %v4445_v42, %v6017_v46 }
 0x198   : > { %v2442_v24 = vpop.f32.mrf.mxu0 }
 0x199   : > { %v2245_v62 = vadd.f32 %v6021_v10, %v1931_v19 }
 0x19a   : > { %v4502_v32 = vpop.f32.mrf.mxu0  ;;  %v6107_v35 = vpop.f32.mrf.mxu1 }
 0x19b   : > { %6455 = vst [vmem:[#allocation30_spill] sm:$0xff] %v6107_v35  ;;  %v1929_v35 = vadd.f32 %v6034_v8, %v5997_v21  ;;  %v1936_v21 = vadd.f32 %v6054_v40, %v6005_v43  ;;  %v2491_v30 = vadd.f32 %v4497_v2, %v2245_v62 }
 0x19c   : > { %v2445_v7 = vpop.f32.mrf.mxu0  ;;  %v6109_v50 = vpop.f32.mrf.mxu1  ;;  %v6465_v62 = vld [vmem:[#allocation28_spill] sm:$0xff] }
 0x19d   : > { %6456 = vst [vmem:[#allocation31_spill] sm:$0xff] %v6109_v50 }
 0x19e   : > { %v4505_v54 = vpop.f32.mrf.mxu0  ;;  %v6111_v28 = vpop.f32.mrf.mxu1 }
 0x19f   : > { %6457 = vst [vmem:[#allocation32_spill] sm:$0xff] %v6111_v28  ;;  %v1932_v28 = vadd.f32 %v6038_v6, %v5999_v15  ;;  %v1939_v15 = vadd.f32 %v4441_v31, %v6009_v5  ;;  %v1937_v6 = vadd.f32 %v1898_v25, %v6011_v45  ;;  %v1941_v5 = vadd.f32 %v1914_v38, %v6019_v1  ;;  %v6462_v38 = vld [vmem:[#allocation25_spill] sm:$0xff] }
 0x1a0   : > { %v2458_v23 = vpop.f32.mrf.mxu0  ;;  %v6113_v57 = vpop.f32.mrf.mxu1  ;;  %v2248_v25 = vadd.f32 %v6063_v12, %v1934_v59 }
 0x1a1   : > { %6458 = vst [vmem:[#allocation33_spill] sm:$0xff] %v6113_v57  ;;  %v1930_v57 = vadd.f32 %v6042_v16, %v6001_v27  ;;  %v2243_v27 = vadd.f32 %v6027_v26, %v1929_v35  ;;  %v1938_v16 = vadd.f32 %v1901_v3, %v6015_v14  ;;  %v2246_v10 = vadd.f32 %v6036_v47, %v1932_v28  ;;  %v6460_v3 = vld [vmem:[#allocation23_spill] sm:$0xff] }
 0x1a2   : > { %v6115_v63 = vpop.f32.mrf.mxu0  ;;  %v4537_v61 = vpop.f32.mrf.mxu1  ;;  %v2249_v26 = vadd.f32 %v6044_v34, %v6046_v22  ;;  %v2250_v14 = vadd.f32 %v6056_v41, %v1936_v21  ;;  %v2253_v47 = vadd.f32 %v6083_v49, %v1939_v15  ;;  %v2251_v1 = vadd.f32 %v6085_v48, %v1937_v6  ;;  %v6461_v41 = vld [vmem:[#allocation22_spill] sm:$0xff] }
 0x1a3   : > { %6459 = vst [vmem:[#allocation34_spill] sm:$0xff] %v6115_v63  ;;  %v1933_v63 = vadd.f32 %v6049_v29, %v6003_v33  ;;  %v1940_v33 = vadd.f32 %v4442_v9, %v6013_v18  ;;  %v2244_v43 = vadd.f32 %v6040_v11, %v1930_v57  ;;  %v2489_v18 = vadd.f32 %v2426_v0, %v2243_v27  ;;  %v6466_v27 = vld [vmem:[#allocation26_spill] sm:$0xff] }
 0x1a4   : > { %v2461_v13 = vpop.f32.mrf.mxu0  ;;  %v6119_v55 = vpop.f32.mrf.mxu1  ;;  %v1944_v11 = vadd.f32 %v4446_v51, %v6024_v20  ;;  %v2252_v34 = vadd.f32 %v6089_v60, %v1938_v16  ;;  %v2492_v22 = vadd.f32 %v4498_v56, %v2246_v10  ;;  %v2255_v42 = vadd.f32 %v6460_v3, %v1941_v5  ;;  %v6463_v51 = vld [vmem:[#allocation27_spill] sm:$0xff] }
 0x1a5   : > { %v2247_v45 = vadd.f32 %v6051_v36, %v1933_v63  ;;  %v2254_v9 = vadd.f32 %v6087_v37, %v1940_v33  ;;  %v2257_v36 = vadd.f32 %v6091_v53, %v1943_v52  ;;  %v1942_v12 = vadd.f32 %v6462_v38, %v6461_v41  ;;  %v6464_v37 = vld [vmem:[#allocation24_spill] sm:$0xff] }
 0x1a6   : > { %v6123_v39 = vpop.f32.mrf.mxu0  ;;  %v6129_v50 = vpop.f32.mrf.mxu1  ;;  %v2499_v63 = vadd.f32 %v4505_v54, %v2253_v47  ;;  %v2917_v57 = vadd.f32 %v6463_v51, %v2491_v30  ;;  %v2915_v2 = vadd.f32 %v2852_v4, %v2489_v18  ;;  %v2490_v48 = vadd.f32 %v2429_v58, %v2244_v43  ;;  %v6469_v43 = vld [vmem:[#allocation30_spill] sm:$0xff] }
 0x1a7   : > { %v2495_v0 = vadd.f32 %v4501_v17, %v2249_v26  ;;  %v2258_v19 = vadd.f32 %v6464_v37, %v1944_v11  ;;  %v2493_v60 = vadd.f32 %v2442_v24, %v2247_v45  ;;  %v2496_v56 = vadd.f32 %v4502_v32, %v2250_v14  ;;  %v6181_v17 = vld [vmem:[%s6407_s2] ss:$0 sm:$0xff]  ;;  %v6470_v26 = vld [vmem:[#allocation31_spill] sm:$0xff] }
 0x1a8   : > { %v6133_v44 = vpop.f32.mrf.mxu0  ;;  %v6141_v8 = vpop.f32.mrf.mxu1  ;;  %v2494_v35 = vadd.f32 %v2445_v7, %v2248_v25  ;;  %v2918_v21 = vadd.f32 %v6465_v62, %v2492_v22  ;;  %v2497_v59 = vadd.f32 %v2458_v23, %v2251_v1  ;;  %v2256_v6 = vadd.f32 %v6466_v27, %v1942_v12  ;;  %v6468_v7 = vld [vmem:[#allocation29_spill] sm:$0xff] }
 0x1a9   : > { %v2925_v33 = vadd.f32 %v4537_v61, %v2499_v63  ;;  %v2498_v58 = vadd.f32 %v2461_v13, %v2252_v34  ;;  %v2916_v10 = vadd.f32 %v6468_v7, %v2490_v48  ;;  %v2921_v52 = vadd.f32 %v6469_v43, %v2495_v0  ;;  %v6471_v61 = vld [vmem:[#allocation32_spill] sm:$0xff]  ;;  %v6472_v18 = vld [vmem:[#allocation33_spill] sm:$0xff] }
 0x1aa   : > { %v6147_v29 = vpop.f32.mrf.mxu0  ;;  %v4541_v40 = vpop.f32.mrf.mxu1  ;;  %v6467_v16 = vld [vmem:[#allocation34_spill] sm:$0xff]  ;;  %v2503_v23 = vadd.f32 %v6123_v39, %v2257_v36  ;;  %v2919_v45 = vadd.f32 %v6470_v26, %v2493_v60  ;;  %v2922_v30 = vadd.f32 %v6471_v61, %v2496_v56  ;;  %v2920_v13 = vadd.f32 %v6472_v18, %v2494_v35 }
 0x1ab   : > { %v2500_v4 = vadd.f32 %v6467_v16, %v2254_v9  ;;  %v2923_v11 = vadd.f32 %v6119_v55, %v2497_v59  ;;  %v2924_v22 = vadd.f32 %v6141_v8, %v2498_v58  ;;  %v2501_v36 = vadd.f32 %v6133_v44, %v2255_v42 }
 0x1ac   : > { %v2477_v31 = vpop.f32.mrf.mxu0  ;;  %v6160_v46 = vpop.f32.mrf.mxu1  ;;  %v2929_v12 = vadd.f32 %v4541_v40, %v2503_v23  ;;  %v2504_v63 = vadd.f32 %v6147_v29, %v2258_v19 }
 0x1ad   : > { %v2926_v39 = vadd.f32 %v6129_v50, %v2500_v4  ;;  %v2502_v51 = vadd.f32 %v2477_v31, %v2256_v6  ;;  %v2927_v16 = vadd.f32 %v6160_v46, %v2501_v36 }
 0x1ae   : > { %v6169_v49 = vpop.f32.mrf.mxu1  ;;  %v4561_v20 = vpop.f32.mrf.mxu0 }
 0x1af   : > { %v3215_v54 = vadd.f32 %v4561_v20, %v2917_v57  ;;  %v2930_v4 = vadd.f32 %v6169_v49, %v2504_v63 }
 0x1b0   : > { %v6173_v53 = vpop.f32.mrf.mxu1  ;;  %v3150_v28 = vpop.f32.mrf.mxu0 }
 0x1b1   : > { %v3213_v15 = vadd.f32 %v3150_v28, %v2915_v2  ;;  %v3238_v1 = vadd.f32 %v6181_v17, %v3215_v54  ;;  %v2928_v58 = vadd.f32 %v6173_v53, %v2502_v51 }
 0x1b2   : > { %v4569_v24 = vpop.f32.mrf.mxu1  ;;  %v4562_v32 = vpop.f32.mrf.mxu0 }
 0x1b3   : > { %v3216_v5 = vadd.f32 %v4562_v32, %v2918_v21  ;;  %v3223_v14 = vadd.f32 %v4569_v24, %v2925_v33  ;;  %v3236_v9 = vadd.f32 %v6181_v17, %v3213_v15  ;;  %v3279_v35 = vmul.f32 %v3238_v1, %v3238_v1 }
 0x1b4   : > { %v3182_v25 = vpop.f32.mrf.mxu1  ;;  %v3153_v47 = vpop.f32.mrf.mxu0 }
 0x1b5   : > { %v3239_v34 = vadd.f32 %v6181_v17, %v3216_v5  ;;  %v3214_v41 = vadd.f32 %v3153_v47, %v2916_v10  ;;  %v3221_v55 = vadd.f32 %v3182_v25, %v2923_v11  ;;  %v6198_v57 = vadd.f32 %v6181_v17, %v3223_v14 }
 0x1b6   : > { %v4570_v3 = vpop.f32.mrf.mxu1  ;;  %v4565_v38 = vpop.f32.mrf.mxu0  ;;  %v3277_v0 = vmul.f32 %v3236_v9, %v3236_v9 }
 0x1b7   : > { %v4104_v20 = vpack.c.bf16 %v3239_v34, %v3238_v1  ;;  %v3224_v2 = vadd.f32 %v4570_v3, %v2926_v39  ;;  %v3237_v50 = vadd.f32 %v6181_v17, %v3214_v41  ;;  %v3219_v42 = vadd.f32 %v4565_v38, %v2921_v52 }
 0x1b8   : > { %v3185_v48 = vpop.f32.mrf.mxu1  ;;  %v3166_v8 = vpop.f32.mrf.mxu0  ;;  %v6206_v28 = vadd.f32 %v6181_v17, %v3221_v55  ;;  %v3280_v32 = vmul.f32 %v3239_v34, %v3239_v34 }
 0x1b9   : > { %4136 = vst [vmem:[%s5182_s30 + $0x8] sm:$0xff] %v4104_v20   ;;  %v3222_v44 = vadd.f32 %v3185_v48, %v2924_v22  ;;  %v3217_v37 = vadd.f32 %v3166_v8, %v2919_v45  ;;  %v6203_v40 = vadd.f32 %v6181_v17, %v3224_v2  ;;  %v3253_v29 = vadd.f32 %v3237_v50, %v3236_v9 }
 0x1ba   : > { %v3278_v19 = vmul.f32 %v3237_v50, %v3237_v50  ;;  %v4099_v31 = vpack.c.bf16 %v3237_v50, %v3236_v9  ;;  %v4573_v60 = vpop.f32.mrf.mxu1  ;;  %v4566_v56 = vpop.f32.mrf.mxu0  ;;  %v3242_v10 = vadd.f32 %v6181_v17, %v3219_v42 }
 0x1bb   : > { %v6209_v62 = vadd.f32 %v6181_v17, %v3222_v44  ;;  %v3227_v21 = vadd.f32 %v4573_v60, %v2929_v12  ;;  %v4124_v59 = vpack.c.bf16 %v6203_v40, %v6198_v57  ;;  %v3254_v54 = vadd.f32 %v3253_v29, %v3238_v1 }
 0x1bc   : > { %v3293_v15 = vadd.f32 %v3278_v19, %v3277_v0  ;;  %4100 = vst [vmem:[%s5182_s30] sm:$0xff] %v4099_v31   ;;  %v3240_v27 = vadd.f32 %v6181_v17, %v3217_v37  ;;  %v3198_v6 = vpop.f32.mrf.mxu1  ;;  %v3169_v33 = vpop.f32.mrf.mxu0  ;;  %v3220_v46 = vadd.f32 %v4566_v56, %v2922_v30  ;;  %v3283_v3 = vmul.f32 %v3242_v10, %v3242_v10 }
 0x1bd   : > { %v4119_v24 = vpack.c.bf16 %v6209_v62, %v6206_v28  ;;  %4140 = vst [vmem:[%s5182_s30 + $0x28] sm:$0xff] %v4124_v59   ;;  %v3255_v43 = vadd.f32 %v3254_v54, %v3239_v34  ;;  %v3225_v23 = vadd.f32 %v3198_v6, %v2927_v16  ;;  %v3218_v49 = vadd.f32 %v3169_v33, %v2920_v13 }
 0x1be   : > { %v3294_v7 = vadd.f32 %v3293_v15, %v3279_v35  ;;  %v4574_v52 = vpop.f32.mrf.mxu1  ;;  %v6226_v53 = vadd.f32 %v6181_v17, %v3227_v21  ;;  %v3281_v45 = vmul.f32 %v3240_v27, %v3240_v27  ;;  %v3243_v14 = vadd.f32 %v6181_v17, %v3220_v46 }
 0x1bf   : > { %4139 = vst [vmem:[%s5182_s30 + $0x20] sm:$0xff] %v4119_v24   ;;  %v3228_v5 = vadd.f32 %v4574_v52, %v2930_v4  ;;  %v3256_v26 = vadd.f32 %v3255_v43, %v3240_v27  ;;  %v3241_v47 = vadd.f32 %v6181_v17, %v3218_v49  ;;  %v3248_v13 = vadd.f32 %v6181_v17, %v3225_v23 }
 0x1c0   : > { %v3295_v61 = vadd.f32 %v3294_v7, %v3280_v32  ;;  %v3201_v18 = vpop.f32.mrf.mxu1  ;;  %v4114_v1 = vpack.c.bf16 %v3243_v14, %v3242_v10  ;;  %v3284_v63 = vmul.f32 %v3243_v14, %v3243_v14 }
 0x1c1   : > { %v6230_v25 = vadd.f32 %v6181_v17, %v3228_v5  ;;  %v3226_v30 = vadd.f32 %v3201_v18, %v2928_v58  ;;  %v3257_v34 = vadd.f32 %v3256_v26, %v3241_v47  ;;  %v3282_v39 = vmul.f32 %v3241_v47, %v3241_v47 }
 0x1c2   : > { %v3296_v11 = vadd.f32 %v3295_v61, %v3281_v45  ;;  %v4109_v22 = vpack.c.bf16 %v3241_v47, %v3240_v27  ;;  %4138 = vst [vmem:[%s5182_s30 + $0x18] sm:$0xff] %v4114_v1  }
 0x1c3   : > { %v4134_v9 = vpack.c.bf16 %v6230_v25, %v6226_v53  ;;  %v3249_v36 = vadd.f32 %v6181_v17, %v3226_v30  ;;  %v3258_v41 = vadd.f32 %v3257_v34, %v3242_v10 }
 0x1c4   : > { %v3297_v38 = vadd.f32 %v3296_v11, %v3282_v39  ;;  %4137 = vst [vmem:[%s5182_s30 + $0x10] sm:$0xff] %v4109_v22  }
 0x1c5   : > { %4142 = vst [vmem:[%s5182_s30 + $0x38] sm:$0xff] %v4134_v9   ;;  %v4129_v12 = vpack.c.bf16 %v3249_v36, %v3248_v13  ;;  %v3259_v17 = vadd.f32 %v3258_v41, %v3243_v14 }
 0x1c6   : > { %v3298_v55 = vadd.f32 %v3297_v38, %v3283_v3 }
 0x1c7   : > { %4141 = vst [vmem:[%s5182_s30 + $0x30] sm:$0xff] %v4129_v12  }
 0x1c8   : > { %4840 = shalt.err (!%p4837_p1)
}
 0x1c9   : > { %s4841_s30 = scalar_lea.hbm %s6246_s0, 1024  ;;  %s4845_s12 = scalar_lea.hbm %s6408_s3, 4096 }
 0x1ca   : > { %p4842_p4 = scmp.ne.s32.totalorder %s6246_s0, %s4841_s30  ;;  %p4846_p6 = scmp.lt.s32.totalorder %s6246_s0, %s6408_s3 }
 0x1cb   : > { %p4847_p8 = scmp.lt.s32.totalorder %s4845_s12, %s4841_s30 }
 0x1cc   : > { %p4843_p2 = pnand %p4842_p4, %p5122_p3 }
 0x1cd   : > { %p4848_p7 = por %p4847_p8, %p4846_p6 }
 0x1ce   : > { %p4844_p5 = pneg %p4843_p2 }
 0x1d0   : > { %p4849_p13 = pnand %p4848_p7, %p4844_p5 }
 0x1d2   : > { %4852 = shalt.err (!%p4849_p13)
}
 0x1d3   : > { %s5008_s19 = smov 64   ;;  %s5009_s20 = smov 4   ;;  %v3285_v20 = vmul.f32 %v6206_v28, %v6206_v28  ;;  %v3260_v51 = vadd.f32 %v3259_v17, %v6206_v28  ;;  %v3299_v2 = vadd.f32 %v3298_v55, %v3284_v63  ;;  %v3286_v50 = vmul.f32 %v6209_v62, %v6209_v62  ;;  %v3252_v43 = vld [vmem:[%s5185_s10] sm:$0x1] }
 0x1d4   : > { %4592 = dma.vmem_to_hbm [thread:$0]  (%p5122_p3), %s6240_s28, 1024, %s6246_s0, %s6251_s8, %s5008_s19, %s5008_s19, %s5009_s20   ;;  %v3287_v0 = vmul.f32 %v6198_v57, %v6198_v57  ;;  %v3288_v37 = vmul.f32 %v6203_v40, %v6203_v40  ;;  %v3289_v31 = vmul.f32 %v3248_v13, %v3248_v13  ;;  %v3290_v28 = vmul.f32 %v3249_v36, %v3249_v36 }
 0x1d5   : > { %v3300_v48 = vadd.f32 %v3299_v2, %v3285_v20  ;;  %v3261_v8 = vadd.f32 %v3260_v51, %v6209_v62  ;;  %v3291_v62 = vmul.f32 %v6226_v53, %v6226_v53  ;;  %v3292_v54 = vmul.f32 %v6230_v25, %v6230_v25  ;;  %s6474_s15 = sadd.s32 4294967295, %s5003_s7   ;;  %s3440_s0 = sshll.u32 %s5185_s10, 4  ;;  %v3276_v46 = vld [vmem:[%s5188_s26] sm:$0x1]  ;;  %s6306_s0 = int_to_ptr.vmem [resolvable:$true] %s3440_s0 }
 0x1d6   : > { %s6294_s28 = sand.u32 1, %s6474_s15   ;;  %s3453_s23 = sshll.u32 %s5188_s26, 4  ;;  %s6315_s23 = int_to_ptr.vmem [resolvable:$true] %s3453_s23 }
 0x1d7   : > { %v3262_v44 = vadd.f32 %v3261_v8, %v6198_v57  ;;  %v3301_v42 = vadd.f32 %v3300_v48, %v3286_v50  ;;  %s6304_s21 = scalar_lea.hbm %s6409_s4, %s6059_s13  ;;  %s6313_s30 = scalar_lea.hbm %s6410_s5, %s6059_s13 }
 0x1d8   : > { %s3402_s11 = scalar_lea.sflag [#allocation5], %s6294_s28  ;;  %s4853_s16 = scalar_lea.vmem %s6306_s0, 16 }
 0x1d9   : > { %v3263_v29 = vadd.f32 %v3262_v44, %v6203_v40  ;;  %v3302_v19 = vadd.f32 %v3301_v42, %v3287_v0  ;;  %p4854_p3 = scmp.ne.s32.totalorder %s6306_s0, %s4853_s16  ;;  %s5010_s12 = smov [#allocation4]  }
 0x1da   : > { %s4857_s27 = sshll.u32 %s5010_s12, 4  ;;  %s4858_s27 = int_to_ptr.vmem [resolvable:$false] %s4857_s27 }
 0x1db   : > { %v3264_v60 = vadd.f32 %v3263_v29, %v3248_v13  ;;  %v3303_v56 = vadd.f32 %v3302_v19, %v3288_v37  ;;  %p4855_p9 = pnand %p4854_p3, %p5151_p12  ;;  %s4859_s17 = scalar_lea.vmem %s4858_s27, 32 }
 0x1dc   : > { %p4860_p11 = scmp.lt.s32.totalorder %s6306_s0, %s4858_s27  ;;  %p4861_p0 = scmp.lt.s32.totalorder %s4859_s17, %s4853_s16 }
 0x1dd   : > { %v3265_v35 = vadd.f32 %v3264_v60, %v3249_v36  ;;  %v3304_v21 = vadd.f32 %v3303_v56, %v3289_v31  ;;  %p4856_p10 = pneg %p4855_p9 }
 0x1de   : > { %p4862_p1 = por %p4861_p0, %p4860_p11 }
 0x1df   : > { %v3266_v59 = vadd.f32 %v3265_v35, %v6226_v53  ;;  %v3305_v57 = vadd.f32 %v3304_v21, %v3290_v28 }
 0x1e0   : > { %p4863_p4 = pnand %p4862_p1, %p4856_p10 }
 0x1e1   : > { %v3267_v40 = vadd.f32 %v3266_v59, %v6230_v25  ;;  %v3306_v15 = vadd.f32 %v3305_v57, %v3291_v62 }
 0x1e3   : > { %v3268_v27 = vrot.slane %v3267_v40, 4  ;;  %v3307_v6 = vadd.f32 %v3306_v15, %v3292_v54 }
 0x1e5   : > { %v3308_v33 = vrot.slane %v3307_v6, 4  ;;  %v3269_v16 = vadd.f32 %v3268_v27, %v3267_v40 }
 0x1e7   : > { %v3270_v4 = vrot.slane %v3269_v16, 2  ;;  %v3309_v58 = vadd.f32 %v3308_v33, %v3307_v6 }
 0x1e9   : > { %v3271_v24 = vadd.f32 %v3270_v4, %v3269_v16  ;;  %v3310_v32 = vrot.slane %v3309_v58, 2 }
 0x1eb   : > { %v3272_v7 = vrot.slane %v3271_v24, 1  ;;  %v3311_v10 = vadd.f32 %v3310_v32, %v3309_v58 }
 0x1ed   : > { %v3273_v52 = vadd.f32 %v3272_v7, %v3271_v24  ;;  %v3312_v23 = vrot.slane %v3311_v10, 1 }
 0x1ef   : > { %v3274_v5 = vadd.f32 %v3273_v52, %v3252_v43  ;;  %v3313_v49 = vadd.f32 %v3312_v23, %v3311_v10 }
 0x1f1   : > { %3275 = vst [vmem:[%s5185_s10] sm:$0x1] %v3274_v5  ;;  %v3314_v53 = vadd.f32 %v3313_v49, %v3276_v46 }
 0x1f2   : > { %4866 = shalt.err (!%p4863_p4)
}
 0x1f3   : > { %s4867_s10 = scalar_lea.hbm %s6304_s21, 16  ;;  %s4871_s20 = scalar_lea.hbm %s6409_s4, 32 }
 0x1f4   : > { %p4868_p2 = scmp.ne.s32.totalorder %s6304_s21, %s4867_s10  ;;  %p4872_p8 = scmp.lt.s32.totalorder %s6304_s21, %s6409_s4 }
 0x1f5   : > { %p4873_p7 = scmp.lt.s32.totalorder %s4871_s20, %s4867_s10 }
 0x1f6   : > { %p4869_p5 = pnand %p4868_p2, %p5151_p12 }
 0x1f7   : > { %p4874_p13 = por %p4873_p7, %p4872_p8 }
 0x1f8   : > { %p4870_p6 = pneg %p4869_p5 }
 0x1fa   : > { %p4875_p3 = pnand %p4874_p13, %p4870_p6 }
 0x1fc   : > { %4878 = shalt.err (!%p4875_p3)
}
 0x1fd   : > { %4593 = dma.vmem_to_hbm [thread:$0]  (%p5151_p12), %s6306_s0, 16, %s6304_s21, %s3402_s11   ;;  %3315 = vst [vmem:[%s5188_s26] sm:$0x1] %v3314_v53 }
 0x1fe   : > { %s4879_s14 = scalar_lea.vmem %s6315_s23, 16  ;;  %s5011_s22 = smov [#allocation6]  }
 0x1ff   : > { %p4880_p9 = scmp.ne.s32.totalorder %s6315_s23, %s4879_s14  ;;  %s4883_s1 = sshll.u32 %s5011_s22, 4  ;;  %s4884_s1 = int_to_ptr.vmem [resolvable:$false] %s4883_s1 }
 0x200   : > { %s4885_s16 = scalar_lea.vmem %s4884_s1, 32  ;;  %p4886_p0 = scmp.lt.s32.totalorder %s6315_s23, %s4884_s1 }
 0x201   : > { %p4881_p10 = pnand %p4880_p9, %p5151_p12  ;;  %p4887_p1 = scmp.lt.s32.totalorder %s4885_s16, %s4879_s14 }
 0x203   : > { %p4882_p11 = pneg %p4881_p10  ;;  %p4888_p4 = por %p4887_p1, %p4886_p0 }
 0x205   : > { %p4889_p2 = pnand %p4888_p4, %p4882_p11 }
 0x207   : > { %4892 = shalt.err (!%p4889_p2)
}
 0x208   : > { %s4893_s0 = scalar_lea.hbm %s6313_s30, 16  ;;  %s4897_s12 = scalar_lea.hbm %s6410_s5, 32 }
 0x209   : > { %p4894_p5 = scmp.ne.s32.totalorder %s6313_s30, %s4893_s0  ;;  %p4898_p7 = scmp.lt.s32.totalorder %s6313_s30, %s6410_s5 }
 0x20a   : > { %p4899_p13 = scmp.lt.s32.totalorder %s4897_s12, %s4893_s0 }
 0x20b   : > { %p4895_p6 = pnand %p4894_p5, %p5151_p12 }
 0x20c   : > { %p4900_p3 = por %p4899_p13, %p4898_p7 }
 0x20d   : > { %p4896_p8 = pneg %p4895_p6 }
 0x20f   : > { %p4901_p9 = pnand %p4900_p3, %p4896_p8 }
 0x211   : > { %4904 = shalt.err (!%p4901_p9)
}
 0x212   : > { %4594 = dma.vmem_to_hbm [thread:$0]  (%p5151_p12), %s6315_s23, 16, %s6313_s30, %s3402_s11  }
 0x213 PF: > { %p4613_p10 = scmp.ge.s32.totalorder %s5003_s7, 2  ;;  %s3478_s10 = sand.u32 1, %s4975_s24  }
 0x214   : > { %p6475_p11 = scmp.ne.s32.totalorder %s6436_s18, 0  ;;  %s3479_s13 = scalar_lea.sflag [#allocation3], %s3478_s10 }
 0x216   : > { %p4601_p0 = pnand %p4613_p10, %p6475_p11 }
 0x218   : > { %p4602_p1 = pneg %p4601_p0 }
 0x21a   : > { %4950 = dma.done.wait (%p4602_p1), %s3479_s13, 1024  }
 0x21b   : > { %4952 = vsyncadd (%p4602_p1), %s3479_s13, 4294966272  ;;  %s6476_s19 = sadd.s32 4294967294, %s5003_s7   ;;  %p6477_p4 = scmp.ne.s32.totalorder %s6440_s29, 0 }
 0x21c   : > { %s3487_s9 = sand.u32 1, %s6476_s19  }
 0x21d   : > { %p4604_p2 = pnand %p4613_p10, %p6477_p4  ;;  %s3488_s28 = scalar_lea.sflag [#allocation5], %s3487_s9 }
 0x21f   : > { %p4605_p5 = pneg %p4604_p2 }
 0x221   : > { %4954 = dma.done.wait (%p4605_p5), %s3488_s28, 32  }
 0x222   : > { %4956 = vsyncadd (%p4605_p5), %s3488_s28, 4294967264  ;;  %s6478_s23 = sld [smem:[#allocation12_spill]] }
 0x228   : > { %s3503_s30 = sand.u32 1, %s6478_s23  }
 0x229   : > { %s3504_s11 = scalar_lea.sflag [#allocation8], %s3503_s30 }
 0x22a   : > { %4958 = dma.done.wait (%p4605_p5), %s3504_s11, 16  }
 0x22b   : > { %4960 = vsyncadd (%p4605_p5), %s3504_s11, 4294967280  ;;  %s26_s7 = sadd.s32 1, %s5003_s7   ;;  %s6479_s21 = sld [smem:[#allocation13_spill]] }
 0x22c   : > { %p23_p12 = scmp.ge.s32.totalorder %s26_s7, 6   ;;  %s6480_s22 = sld [smem:[#allocation14_spill]] }
 0x22d   : > { %s6481_s23 = sld [smem:[#allocation20_spill]]  ;;  %s6488_s24 = smov %s4979_s25 }
 0x22e   : > { %s6482_s18 = sld [smem:[#allocation15_spill]] }
 0x22f   : > { %s6483_s26 = sld [smem:[#allocation21_spill]] }
 0x230   : > { %s6484_s27 = sld [smem:[#allocation16_spill]]  ;;  %25 = sbr.rel (!%p23_p12) target bundleno = 14 (0xe), region = 131 }
 0x231   : > { %s6485_s28 = sld [smem:[#allocation17_spill]] }
 0x232   : > { %s6486_s29 = sld [smem:[#allocation18_spill]] }
 0x233   : > { %s6487_s30 = sld [smem:[#allocation19_spill]] }
 0x234   : > { %s6489_s25 = smov %s6482_s18 }
 0x235   :  { %3508 = vsyncpa [#allocation3], 1 }
 0x236   :  { %3510 = vsyncpa [#allocation3 + $0x1], 1 }
 0x237   :  { %3511 = vsyncpa [#allocation5], 1 }
 0x238   :  { %3513 = vsyncpa [#allocation5 + $0x1], 1 }
 0x239   :  { %3514 = vsyncpa [#allocation8], 1 }
 0x23a   :  { %3516 = vsyncpa [#allocation8 + $0x1], 1 }

</bundles_post_ra>
